<compile_context>
chip_gen: v7x
topology: tpu7x:2x2x1
jax: 0.10.0
libtpu: 0.0.40
codegen_flags: <defaults>
</compile_context>

<pallas_src>
import functools
import math

import jax
import jax.numpy as jnp
from jax.experimental import pallas as pl
from jax.experimental.pallas import tpu as pltpu


# ----------------------------------------------------------------------------
# Glue: PositionalEncoding2D (deterministic, no parameters) in plain JAX.
# ----------------------------------------------------------------------------
def positional_encoding_2d(B, H, W, C, dtype=jnp.float32):
    ch = int(math.ceil(C / 4) * 2)
    inv_freq = 1.0 / (10000.0 ** (jnp.arange(0, ch, 2, dtype=jnp.float32) / ch))
    pos_x = jnp.arange(H, dtype=jnp.float32)
    pos_y = jnp.arange(W, dtype=jnp.float32)

    def get_emb(sin_inp):  # (N, ch//2) -> (N, ch), interleaved sin/cos
        return jnp.stack([jnp.sin(sin_inp), jnp.cos(sin_inp)], axis=-1).reshape(
            sin_inp.shape[0], -1)

    emb_x = get_emb(pos_x[:, None] * inv_freq[None, :])  # (H, ch)
    emb_y = get_emb(pos_y[:, None] * inv_freq[None, :])  # (W, ch)
    emb = jnp.zeros((H, W, 2 * ch), dtype=jnp.float32)
    emb = emb.at[:, :, :ch].set(emb_x[:, None, :])
    emb = emb.at[:, :, ch:2 * ch].set(emb_y[None, :, :])
    pe = emb[None, :, :, :C]
    return jnp.broadcast_to(pe, (B, H, W, C)).astype(dtype)


# ----------------------------------------------------------------------------
# Fused kernel: attention summaries + folded generators + dynamic conv.
# One grid step per batch element ("parallel" -> one batch per TC on v7x).
# ----------------------------------------------------------------------------
def _fused_kernel(x_ref, slab_ref, out_ref, w3_ref, *,
                  W, kH, kW, C, L, out_C, offs):
    f32 = jnp.float32
    bf16 = jnp.bfloat16

    def const(name):                      # static slice of the packed slab
        r0, r1, cw = offs[name]
        return slab_ref[r0:r1, 0:cw]

    x = x_ref[0]                          # (C, Lp)  bf16, channels-major
    x_img = x[:, :L]                      # (C, L)   aligned slice

    # ---- 1. K/V projection (bf16 MXU).  PE + bias folded offline into kvpe. ---
    kv = jnp.dot(const('wkv').astype(bf16), x_img,
                 preferred_element_type=f32) + const('kvpe')          # (2C, L)
    k_t = kv[:C, :]                                                   # (C, L)
    v_t = kv[C:, :]                                                   # (C, L)

    # ---- 2. scores / softmax / PV (query path precomputed & head-masked) -----
    s = jnp.dot(const('qblk').astype(bf16), k_t.astype(bf16),
                preferred_element_type=f32)                           # (H*Nq, L)
    s = s - jnp.max(s, axis=-1, keepdims=True)
    p = jnp.exp(s)
    denom = jnp.sum(p, axis=-1, keepdims=True)                        # (H*Nq, 1)
    ctx = jax.lax.dot_general(p.astype(bf16), v_t.astype(bf16),
                              (((1,), (1,)), ((), ())),
                              preferred_element_type=f32)             # (H*Nq, C)
    ctx = ctx / denom
    # Recombine heads: zero foreign channels and sum the per-head copies.
    attn = jnp.dot(const('rept'), ctx * const('hm'),
                   preferred_element_type=f32)                        # (Nq, C)

    # ---- 3. folded affine generators (out_proj o reducer o filter/bias) ------
    fw = jnp.dot(attn, const('gf'),
                 preferred_element_type=f32) + const('gfb')           # (Nq, out_C*C)
    attn_sum = jnp.sum(attn, axis=0, keepdims=True)                   # (1, C)
    bias_col = jnp.sum(const('gbt') * attn_sum, axis=1,
                       keepdims=True) + const('gbc')                  # (out_C, 1)

    # Repack generated filters into per-tap (out_C, C) matrices in VMEM scratch:
    # lane slices + static sublane-index stores only, no minor-dim reshapes.
    for o in range(out_C):
        w3_ref[:, o, :] = fw[:, o * C:(o + 1) * C]

    # ---- 4. dynamic grouped conv: kH*kW bf16 MXU taps ------------------------
    # Unaligned lane slices stay interleaved with the dots (ride the XLU slot).
    acc = jnp.zeros((out_C, L), f32)
    for dy in range(kH):
        for dx in range(kW):
            off = dy * W + dx
            acc = acc + jnp.dot(w3_ref[dy * kW + dx].astype(bf16),
                                x[:, off:off + L],
                                preferred_element_type=f32)
    # Invalid (wrapped / bottom) columns are sliced off in the wrapper.
    out_ref[0] = acc + bias_col


def forward_pallas(x, params, *, out_C, k, num_heads, value_dim):
    B, C, H, W = x.shape
    L = H * W
    Nq = k * k
    d = C // num_heads
    scale = 1.0 / math.sqrt(d)
    oH, oW = H - k + 1, W - k + 1
    max_off = (k - 1) * W + (k - 1)
    Lp = ((L + max_off + 127) // 128) * 128

    # ---- batch-invariant folding (offline, accurate f32) ----------------------
    with jax.default_matmul_precision("float32"):
        pe_cl = positional_encoding_2d(1, H, W, C).reshape(L, C).T        # (C, L)
        wkv = jnp.concatenate([params['wk'], params['wv']], axis=0)        # (2C, C)
        bkv = jnp.concatenate([params['bk'], params['bv']], axis=0)[:, None]
        kvpe = wkv @ pe_cl + bkv                                           # (2C, L)

        bp_flat = params['baseplate'].reshape(Nq, C)
        q0 = (bp_flat @ params['wq'].T + params['bq'][None, :]) * scale    # (Nq, C)
        row_head = jnp.arange(num_heads * Nq) // Nq
        col_head = jnp.arange(C) // d
        hm = (row_head[:, None] == col_head[None, :]).astype(jnp.float32)  # (H*Nq, C)
        qblk = jnp.tile(q0, (num_heads, 1)) * hm                           # (H*Nq, C)
        rept = jnp.tile(jnp.eye(Nq, dtype=jnp.float32), (1, num_heads))    # (Nq, H*Nq)

        # filter path: fw = attn @ gf + gfb   (exact affine fold, no nonlinearity)
        gf = params['wo'].T @ params['wr'].T @ params['wf'].T              # (C, out_C*C)
        gfb = ((params['bo'][None] @ params['wr'].T + params['br'][None])
               @ params['wf'].T + params['bf'][None])                      # (1, out_C*C)
        # bias path: bias = mean_q(attn) @ gb + gbb   (1/Nq folded into gbt)
        gb = params['wo'].T @ params['wr'].T @ params['wb'].T              # (C, out_C)
        gbb = ((params['bo'][None] @ params['wr'].T + params['br'][None])
               @ params['wb'].T + params['bb'][None])                      # (1, out_C)
        gbt = gb.T / Nq                                                    # (out_C, C)
        gbc = gbb.T                                                        # (out_C, 1)

        # ---- pack all constants into ONE lane-dense f32 slab (single DMA) ----
        pieces = [('kvpe', kvpe), ('gf', gf), ('gfb', gfb), ('wkv', wkv),
                  ('qblk', qblk), ('hm', hm), ('rept', rept),
                  ('gbt', gbt), ('gbc', gbc)]
        lane_w = max(int(a.shape[1]) for _, a in pieces)
        offs, row = {}, 0
        for name, arr in pieces:
            row = ((row + 7) // 8) * 8        # 8-sublane aligned starts
            offs[name] = (row, row + int(arr.shape[0]), int(arr.shape[1]))
            row += int(arr.shape[0])
        total_rows = ((row + 7) // 8) * 8
        slab = jnp.zeros((total_rows, lane_w), jnp.float32)
        for name, arr in pieces:
            r0, r1, cw = offs[name]
            slab = slab.at[r0:r1, :cw].set(arr.astype(jnp.float32))

    # Image: channels-major, lane-padded, bf16 (read once: K/V proj + conv taps).
    x_pad = jnp.pad(x.reshape(B, C, L),
                    ((0, 0), (0, 0), (0, Lp - L))).astype(jnp.bfloat16)

    kernel = functools.partial(_fused_kernel, W=W, kH=k, kW=k, C=C, L=L,
                               out_C=out_C, offs=offs)
    out_flat = pl.pallas_call(
        kernel,
        out_shape=jax.ShapeDtypeStruct((B, out_C, L), jnp.float32),
        grid=(B,),
        in_specs=[pl.BlockSpec((1, C, Lp), lambda b: (b, 0, 0)),
                  pl.BlockSpec((total_rows, lane_w), lambda b: (0, 0))],
        out_specs=pl.BlockSpec((1, out_C, L), lambda b: (b, 0, 0)),
        scratch_shapes=[pltpu.VMEM((Nq, out_C, C), jnp.float32)],
        compiler_params=pltpu.CompilerParams(dimension_semantics=("parallel",)),
    )(x_pad, slab)

    # Lane-dense slab -> NCHW, dropping the wrapped / out-of-range positions.
    return out_flat.reshape(B, out_C, H, W)[:, :, :oH, :oW]


# ----------------------------------------------------------------------------
# Parameters (deterministic, synthetic) and pure-JAX reference.
# ----------------------------------------------------------------------------
def init_params(key, C, out_C, k, value_dim):
    keys = jax.random.split(key, 16)

    def lin(kw, kb, out_dim, in_dim):
        w = jax.random.normal(kw, (out_dim, in_dim), jnp.float32) / math.sqrt(in_dim)
        b = jax.random.normal(kb, (out_dim,), jnp.float32) * 0.01
        return w, b

    p = {}
    p['baseplate'] = jax.random.uniform(keys[0], (k, k, C), jnp.float32)
    p['wq'], p['bq'] = lin(keys[1], keys[2], C, C)          # MHA in_proj (q)
    p['wk'], p['bk'] = lin(keys[3], keys[4], C, C)          # MHA in_proj (k)
    p['wv'], p['bv'] = lin(keys[5], keys[6], C, C)          # MHA in_proj (v)
    p['wo'], p['bo'] = lin(keys[7], keys[8], C, C)          # MHA out_proj
    p['wr'], p['br'] = lin(keys[9], keys[10], value_dim, C)           # value_reducer
    p['wf'], p['bf'] = lin(keys[11], keys[12], C * out_C, value_dim)  # filter_generator
    p['wb'], p['bb'] = lin(keys[13], keys[14], out_C, value_dim)      # bias_generator
    return p


def forward_reference(x, params, *, out_C, k, num_heads, value_dim):
    B, C, H, W = x.shape
    L = H * W
    Nq = k * k
    d = C // num_heads
    pe = positional_encoding_2d(B, H, W, C).reshape(B, L, C)
    x_pe = x.reshape(B, C, L).transpose(0, 2, 1) + pe
    bp = params['baseplate'].reshape(Nq, C)

    q = bp @ params['wq'].T + params['bq']
    kk = jnp.einsum('blc,dc->bld', x_pe, params['wk']) + params['bk']
    vv = jnp.einsum('blc,dc->bld', x_pe, params['wv']) + params['bv']
    qh = q.reshape(Nq, num_heads, d).transpose(1, 0, 2)
    kh = kk.reshape(B, L, num_heads, d).transpose(0, 2, 1, 3)
    vh = vv.reshape(B, L, num_heads, d).transpose(0, 2, 1, 3)
    s = jnp.einsum('hqd,bhld->bhql', qh, kh) / math.sqrt(d)
    p = jax.nn.softmax(s, axis=-1)
    o = jnp.einsum('bhql,bhld->bhqd', p, vh)
    attn = o.transpose(0, 2, 1, 3).reshape(B, Nq, C)
    summ = attn @ params['wo'].T + params['bo']
    red = summ @ params['wr'].T + params['br']
    fw = red @ params['wf'].T + params['bf']
    fb = red @ params['wb'].T + params['bb']
    w_conv = fw.reshape(B, k, k, out_C, C).transpose(0, 3, 4, 1, 2).reshape(
        B * out_C, C, k, k)
    b_conv = fb.mean(axis=1).reshape(-1)
    conv = jax.lax.conv_general_dilated(
        x.reshape(1, B * C, H, W), w_conv, (1, 1), 'VALID',
        dimension_numbers=('NCHW', 'OIHW', 'NCHW'),
        feature_group_count=B)
    conv = conv + b_conv.reshape(1, -1, 1, 1)
    return conv.reshape(B, out_C, H - k + 1, W - k + 1)


if __name__ == "__main__":
    # Config: in_channels=32, out_channels=8, kernel_size=3, stride=1,
    # padding=0, bias=True; instructions: num_heads=4, value_dim=16,
    # dropout=0.0, add_kv_bias=False, add_positional_encodings=True.
    B, C, H, W = 2, 32, 16, 16
    out_C, k, num_heads, value_dim = 8, 3, 4, 16

    key = jax.random.PRNGKey(0)
    kx, kp = jax.random.split(key)
    x = jax.random.normal(kx, (B, C, H, W), jnp.float32)
    params = init_params(kp, C, out_C, k, value_dim)

    out = forward_pallas(x, params, out_C=out_C, k=k,
                         num_heads=num_heads, value_dim=value_dim)
    out = jax.block_until_ready(out)

    # Accurate f32 reference for the comparison.
    with jax.default_matmul_precision("float32"):
        ref = forward_reference(x, params, out_C=out_C, k=k,
                                num_heads=num_heads, value_dim=value_dim)
    ref = jax.block_until_ready(ref)

    assert out.shape == (B, out_C, H - k + 1, W - k + 1), out.shape
    max_err = float(jnp.max(jnp.abs(out - ref)))
    ref_scale = float(jnp.max(jnp.abs(ref)))
    # Tolerance reflects bf16 MXU operands (per perf review); still catches any
    # layout / indexing bug, which would be O(1) relative error.
    tol = 3e-2 * max(1.0, ref_scale)
    if max_err > tol:
        raise AssertionError(
            f"mismatch vs reference, max abs err = {max_err} (tol {tol})")
    print("KERNEL_OK")
</pallas_src>

<mosaic_0001>
module attributes {stable_mosaic.version = 11 : i64} {
  func.func @_fused_kernel(%arg0: i32, %arg1: memref<1x32x384xbf16, #tpu.memory_space<vmem>>, %arg2: memref<280x256xf32, #tpu.memory_space<vmem>>, %arg3: memref<1x8x256xf32, #tpu.memory_space<vmem>>, %arg4: memref<9x8x32xf32, #tpu.memory_space<vmem>>) attributes {dimension_semantics = [#tpu.dimension_semantics<parallel>], iteration_bounds = array<i64: 2>, scalar_prefetch = 0 : i64, scratch_operands = 1 : i64, tpu.core_type = #tpu.core_type<tc>, window_params = [{transform_indices = @transform_0, window_bounds = array<i64: 1, 32, 384>}, {pipeline_mode = #tpu.pipeline_mode<synchronous>, transform_indices = @transform_1, window_bounds = array<i64: 280, 256>}, {transform_indices = @transform_2, window_bounds = array<i64: 1, 8, 256>}]} {
    %c0 = arith.constant 0 : index
    %c0_0 = arith.constant 0 : index
    %c0_1 = arith.constant 0 : index
    %0 = vector.load %arg1[%c0, %c0_0, %c0_1] : memref<1x32x384xbf16, #tpu.memory_space<vmem>>, vector<1x32x384xbf16>
    %1 = vector.shape_cast %0 : vector<1x32x384xbf16> to vector<32x384xbf16>
    %2 = vector.extract_strided_slice %1 {offsets = [0, 0], sizes = [32, 256], strides = [1, 1]} : vector<32x384xbf16> to vector<32x256xbf16>
    %c104 = arith.constant 104 : index
    %c0_2 = arith.constant 0 : index
    %3 = vector.load %arg2[%c104, %c0_2] : memref<280x256xf32, #tpu.memory_space<vmem>>, vector<64x32xf32>
    %4 = arith.truncf %3 : vector<64x32xf32> to vector<64x32xbf16>
    %cst = arith.constant dense<0.000000e+00> : vector<64x256xf32>
    %5 = tpu.matmul %4, %2, %cst {dimension_numbers = #tpu.dot_dimension_numbers<[1], [0], [0], [1], [0, 0, 1, 1], [], []>} : vector<64x32xbf16>, vector<32x256xbf16>, vector<64x256xf32> -> vector<64x256xf32>
    %c0_3 = arith.constant 0 : index
    %c0_4 = arith.constant 0 : index
    %6 = vector.load %arg2[%c0_3, %c0_4] : memref<280x256xf32, #tpu.memory_space<vmem>>, vector<64x256xf32>
    %7 = arith.addf %5, %6 : vector<64x256xf32>
    %8 = vector.extract_strided_slice %7 {offsets = [0, 0], sizes = [32, 256], strides = [1, 1]} : vector<64x256xf32> to vector<32x256xf32>
    %9 = vector.extract_strided_slice %7 {offsets = [32, 0], sizes = [32, 256], strides = [1, 1]} : vector<64x256xf32> to vector<32x256xf32>
    %c168 = arith.constant 168 : index
    %c0_5 = arith.constant 0 : index
    %10 = vector.load %arg2[%c168, %c0_5] : memref<280x256xf32, #tpu.memory_space<vmem>>, vector<36x32xf32>
    %11 = arith.truncf %10 : vector<36x32xf32> to vector<36x32xbf16>
    %12 = arith.truncf %8 : vector<32x256xf32> to vector<32x256xbf16>
    %cst_6 = arith.constant dense<0.000000e+00> : vector<36x256xf32>
    %13 = tpu.matmul %11, %12, %cst_6 {dimension_numbers = #tpu.dot_dimension_numbers<[1], [0], [0], [1], [0, 0, 1, 1], [], []>} : vector<36x32xbf16>, vector<32x256xbf16>, vector<36x256xf32> -> vector<36x256xf32>
    %cst_7 = arith.constant dense<0xFF800000> : vector<36xf32>
    %14 = vector.multi_reduction <maximumf>, %13, %cst_7 [1] : vector<36x256xf32> to vector<36xf32>
    %15 = vector.shape_cast %14 : vector<36xf32> to vector<36x1xf32>
    %16 = vector.broadcast %15 : vector<36x1xf32> to vector<36x256xf32>
    %17 = arith.subf %13, %16 : vector<36x256xf32>
    %18 = math.exp %17 : vector<36x256xf32>
    %cst_8 = arith.constant dense<0.000000e+00> : vector<36xf32>
    %19 = vector.multi_reduction <add>, %18, %cst_8 [1] : vector<36x256xf32> to vector<36xf32>
    %20 = vector.shape_cast %19 : vector<36xf32> to vector<36x1xf32>
    %21 = arith.truncf %18 : vector<36x256xf32> to vector<36x256xbf16>
    %22 = arith.truncf %9 : vector<32x256xf32> to vector<32x256xbf16>
    %cst_9 = arith.constant dense<0.000000e+00> : vector<36x32xf32>
    %23 = tpu.matmul %21, %22, %cst_9 {dimension_numbers = #tpu.dot_dimension_numbers<[1], [1], [0], [0], [0, 0, 1, 0], [], []>} : vector<36x256xbf16>, vector<32x256xbf16>, vector<36x32xf32> -> vector<36x32xf32>
    %24 = vector.broadcast %20 : vector<36x1xf32> to vector<36x32xf32>
    %25 = arith.divf %23, %24 : vector<36x32xf32>
    %c248 = arith.constant 248 : index
    %c0_10 = arith.constant 0 : index
    %26 = vector.load %arg2[%c248, %c0_10] : memref<280x256xf32, #tpu.memory_space<vmem>>, vector<9x36xf32>
    %c208 = arith.constant 208 : index
    %c0_11 = arith.constant 0 : index
    %27 = vector.load %arg2[%c208, %c0_11] : memref<280x256xf32, #tpu.memory_space<vmem>>, vector<36x32xf32>
    %28 = arith.mulf %25, %27 : vector<36x32xf32>
    %cst_12 = arith.constant dense<0.000000e+00> : vector<9x32xf32>
    %29 = tpu.matmul %26, %28, %cst_12 {dimension_numbers = #tpu.dot_dimension_numbers<[1], [0], [0], [1], [0, 0, 1, 1], [], []>} : vector<9x36xf32>, vector<36x32xf32>, vector<9x32xf32> -> vector<9x32xf32>
    %c64 = arith.constant 64 : index
    %c0_13 = arith.constant 0 : index
    %30 = vector.load %arg2[%c64, %c0_13] : memref<280x256xf32, #tpu.memory_space<vmem>>, vector<32x256xf32>
    %cst_14 = arith.constant dense<0.000000e+00> : vector<9x256xf32>
    %31 = tpu.matmul %29, %30, %cst_14 {dimension_numbers = #tpu.dot_dimension_numbers<[1], [0], [0], [1], [0, 0, 1, 1], [], []>} : vector<9x32xf32>, vector<32x256xf32>, vector<9x256xf32> -> vector<9x256xf32>
    %c96 = arith.constant 96 : index
    %c0_15 = arith.constant 0 : index
    %32 = vector.load %arg2[%c96, %c0_15] : memref<280x256xf32, #tpu.memory_space<vmem>>, vector<1x256xf32>
    %33 = vector.broadcast %32 : vector<1x256xf32> to vector<9x256xf32>
    %34 = arith.addf %31, %33 : vector<9x256xf32>
    %cst_16 = arith.constant dense<0.000000e+00> : vector<32xf32>
    %35 = vector.multi_reduction <add>, %29, %cst_16 [0] : vector<9x32xf32> to vector<32xf32>
    %36 = vector.shape_cast %35 : vector<32xf32> to vector<1x32xf32>
    %c264 = arith.constant 264 : index
    %c0_17 = arith.constant 0 : index
    %37 = vector.load %arg2[%c264, %c0_17] : memref<280x256xf32, #tpu.memory_space<vmem>>, vector<8x32xf32>
    %38 = vector.broadcast %36 : vector<1x32xf32> to vector<8x32xf32>
    %39 = arith.mulf %37, %38 : vector<8x32xf32>
    %cst_18 = arith.constant dense<0.000000e+00> : vector<8xf32>
    %40 = vector.multi_reduction <add>, %39, %cst_18 [1] : vector<8x32xf32> to vector<8xf32>
    %41 = vector.shape_cast %40 : vector<8xf32> to vector<8x1xf32>
    %c272 = arith.constant 272 : index
    %c0_19 = arith.constant 0 : index
    %42 = vector.load %arg2[%c272, %c0_19] : memref<280x256xf32, #tpu.memory_space<vmem>>, vector<8x1xf32>
    %43 = arith.addf %41, %42 : vector<8x1xf32>
    %44 = vector.extract_strided_slice %34 {offsets = [0, 0], sizes = [9, 32], strides = [1, 1]} : vector<9x256xf32> to vector<9x32xf32>
    %c0_20 = arith.constant 0 : index
    %c0_21 = arith.constant 0 : index
    %c0_22 = arith.constant 0 : index
    %45 = vector.load %arg4[%c0_20, %c0_21, %c0_22] : memref<9x8x32xf32, #tpu.memory_space<vmem>>, vector<9x1x32xf32>
    %46 = vector.shape_cast %45 : vector<9x1x32xf32> to vector<9x32xf32>
    %47 = vector.shape_cast %44 : vector<9x32xf32> to vector<9x1x32xf32>
    tpu.vector_store %arg4[%c0_20, %c0_21, %c0_22], %47 {strides = array<i32>} : memref<9x8x32xf32, #tpu.memory_space<vmem>>, vector<9x1x32xf32>,
    %48 = vector.extract_strided_slice %34 {offsets = [0, 32], sizes = [9, 32], strides = [1, 1]} : vector<9x256xf32> to vector<9x32xf32>
    %c0_23 = arith.constant 0 : index
    %c1 = arith.constant 1 : index
    %c0_24 = arith.constant 0 : index
    %49 = vector.load %arg4[%c0_23, %c1, %c0_24] : memref<9x8x32xf32, #tpu.memory_space<vmem>>, vector<9x1x32xf32>
    %50 = vector.shape_cast %49 : vector<9x1x32xf32> to vector<9x32xf32>
    %51 = vector.shape_cast %48 : vector<9x32xf32> to vector<9x1x32xf32>
    tpu.vector_store %arg4[%c0_23, %c1, %c0_24], %51 {strides = array<i32>} : memref<9x8x32xf32, #tpu.memory_space<vmem>>, vector<9x1x32xf32>,
    %52 = vector.extract_strided_slice %34 {offsets = [0, 64], sizes = [9, 32], strides = [1, 1]} : vector<9x256xf32> to vector<9x32xf32>
    %c0_25 = arith.constant 0 : index
    %c2 = arith.constant 2 : index
    %c0_26 = arith.constant 0 : index
    %53 = vector.load %arg4[%c0_25, %c2, %c0_26] : memref<9x8x32xf32, #tpu.memory_space<vmem>>, vector<9x1x32xf32>
    %54 = vector.shape_cast %53 : vector<9x1x32xf32> to vector<9x32xf32>
    %55 = vector.shape_cast %52 : vector<9x32xf32> to vector<9x1x32xf32>
    tpu.vector_store %arg4[%c0_25, %c2, %c0_26], %55 {strides = array<i32>} : memref<9x8x32xf32, #tpu.memory_space<vmem>>, vector<9x1x32xf32>,
    %56 = vector.extract_strided_slice %34 {offsets = [0, 96], sizes = [9, 32], strides = [1, 1]} : vector<9x256xf32> to vector<9x32xf32>
    %c0_27 = arith.constant 0 : index
    %c3 = arith.constant 3 : index
    %c0_28 = arith.constant 0 : index
    %57 = vector.load %arg4[%c0_27, %c3, %c0_28] : memref<9x8x32xf32, #tpu.memory_space<vmem>>, vector<9x1x32xf32>
    %58 = vector.shape_cast %57 : vector<9x1x32xf32> to vector<9x32xf32>
    %59 = vector.shape_cast %56 : vector<9x32xf32> to vector<9x1x32xf32>
    tpu.vector_store %arg4[%c0_27, %c3, %c0_28], %59 {strides = array<i32>} : memref<9x8x32xf32, #tpu.memory_space<vmem>>, vector<9x1x32xf32>,
    %60 = vector.extract_strided_slice %34 {offsets = [0, 128], sizes = [9, 32], strides = [1, 1]} : vector<9x256xf32> to vector<9x32xf32>
    %c0_29 = arith.constant 0 : index
    %c4 = arith.constant 4 : index
    %c0_30 = arith.constant 0 : index
    %61 = vector.load %arg4[%c0_29, %c4, %c0_30] : memref<9x8x32xf32, #tpu.memory_space<vmem>>, vector<9x1x32xf32>
    %62 = vector.shape_cast %61 : vector<9x1x32xf32> to vector<9x32xf32>
    %63 = vector.shape_cast %60 : vector<9x32xf32> to vector<9x1x32xf32>
    tpu.vector_store %arg4[%c0_29, %c4, %c0_30], %63 {strides = array<i32>} : memref<9x8x32xf32, #tpu.memory_space<vmem>>, vector<9x1x32xf32>,
    %64 = vector.extract_strided_slice %34 {offsets = [0, 160], sizes = [9, 32], strides = [1, 1]} : vector<9x256xf32> to vector<9x32xf32>
    %c0_31 = arith.constant 0 : index
    %c5 = arith.constant 5 : index
    %c0_32 = arith.constant 0 : index
    %65 = vector.load %arg4[%c0_31, %c5, %c0_32] : memref<9x8x32xf32, #tpu.memory_space<vmem>>, vector<9x1x32xf32>
    %66 = vector.shape_cast %65 : vector<9x1x32xf32> to vector<9x32xf32>
    %67 = vector.shape_cast %64 : vector<9x32xf32> to vector<9x1x32xf32>
    tpu.vector_store %arg4[%c0_31, %c5, %c0_32], %67 {strides = array<i32>} : memref<9x8x32xf32, #tpu.memory_space<vmem>>, vector<9x1x32xf32>,
    %68 = vector.extract_strided_slice %34 {offsets = [0, 192], sizes = [9, 32], strides = [1, 1]} : vector<9x256xf32> to vector<9x32xf32>
    %c0_33 = arith.constant 0 : index
    %c6 = arith.constant 6 : index
    %c0_34 = arith.constant 0 : index
    %69 = vector.load %arg4[%c0_33, %c6, %c0_34] : memref<9x8x32xf32, #tpu.memory_space<vmem>>, vector<9x1x32xf32>
    %70 = vector.shape_cast %69 : vector<9x1x32xf32> to vector<9x32xf32>
    %71 = vector.shape_cast %68 : vector<9x32xf32> to vector<9x1x32xf32>
    tpu.vector_store %arg4[%c0_33, %c6, %c0_34], %71 {strides = array<i32>} : memref<9x8x32xf32, #tpu.memory_space<vmem>>, vector<9x1x32xf32>,
    %72 = vector.extract_strided_slice %34 {offsets = [0, 224], sizes = [9, 32], strides = [1, 1]} : vector<9x256xf32> to vector<9x32xf32>
    %c0_35 = arith.constant 0 : index
    %c7 = arith.constant 7 : index
    %c0_36 = arith.constant 0 : index
    %73 = vector.load %arg4[%c0_35, %c7, %c0_36] : memref<9x8x32xf32, #tpu.memory_space<vmem>>, vector<9x1x32xf32>
    %74 = vector.shape_cast %73 : vector<9x1x32xf32> to vector<9x32xf32>
    %75 = vector.shape_cast %72 : vector<9x32xf32> to vector<9x1x32xf32>
    tpu.vector_store %arg4[%c0_35, %c7, %c0_36], %75 {strides = array<i32>} : memref<9x8x32xf32, #tpu.memory_space<vmem>>, vector<9x1x32xf32>,
    %cst_37 = arith.constant 0.000000e+00 : f32
    %76 = vector.broadcast %cst_37 : f32 to vector<8x256xf32>
    %c0_38 = arith.constant 0 : index
    %c0_39 = arith.constant 0 : index
    %c0_40 = arith.constant 0 : index
    %77 = vector.load %arg4[%c0_38, %c0_39, %c0_40] : memref<9x8x32xf32, #tpu.memory_space<vmem>>, vector<1x8x32xf32>
    %78 = vector.shape_cast %77 : vector<1x8x32xf32> to vector<8x32xf32>
    %79 = arith.truncf %78 : vector<8x32xf32> to vector<8x32xbf16>
    %80 = vector.extract_strided_slice %1 {offsets = [0, 0], sizes = [32, 256], strides = [1, 1]} : vector<32x384xbf16> to vector<32x256xbf16>
    %cst_41 = arith.constant dense<0.000000e+00> : vector<8x256xf32>
    %81 = tpu.matmul %79, %80, %cst_41 {dimension_numbers = #tpu.dot_dimension_numbers<[1], [0], [0], [1], [0, 0, 1, 1], [], []>} : vector<8x32xbf16>, vector<32x256xbf16>, vector<8x256xf32> -> vector<8x256xf32>
    %82 = arith.addf %76, %81 : vector<8x256xf32>
    %c1_42 = arith.constant 1 : index
    %c0_43 = arith.constant 0 : index
    %c0_44 = arith.constant 0 : index
    %83 = vector.load %arg4[%c1_42, %c0_43, %c0_44] : memref<9x8x32xf32, #tpu.memory_space<vmem>>, vector<1x8x32xf32>
    %84 = vector.shape_cast %83 : vector<1x8x32xf32> to vector<8x32xf32>
    %85 = arith.truncf %84 : vector<8x32xf32> to vector<8x32xbf16>
    %86 = vector.extract_strided_slice %1 {offsets = [0, 1], sizes = [32, 256], strides = [1, 1]} : vector<32x384xbf16> to vector<32x256xbf16>
    %cst_45 = arith.constant dense<0.000000e+00> : vector<8x256xf32>
    %87 = tpu.matmul %85, %86, %cst_45 {dimension_numbers = #tpu.dot_dimension_numbers<[1], [0], [0], [1], [0, 0, 1, 1], [], []>} : vector<8x32xbf16>, vector<32x256xbf16>, vector<8x256xf32> -> vector<8x256xf32>
    %88 = arith.addf %82, %87 : vector<8x256xf32>
    %c2_46 = arith.constant 2 : index
    %c0_47 = arith.constant 0 : index
    %c0_48 = arith.constant 0 : index
    %89 = vector.load %arg4[%c2_46, %c0_47, %c0_48] : memref<9x8x32xf32, #tpu.memory_space<vmem>>, vector<1x8x32xf32>
    %90 = vector.shape_cast %89 : vector<1x8x32xf32> to vector<8x32xf32>
    %91 = arith.truncf %90 : vector<8x32xf32> to vector<8x32xbf16>
    %92 = vector.extract_strided_slice %1 {offsets = [0, 2], sizes = [32, 256], strides = [1, 1]} : vector<32x384xbf16> to vector<32x256xbf16>
    %cst_49 = arith.constant dense<0.000000e+00> : vector<8x256xf32>
    %93 = tpu.matmul %91, %92, %cst_49 {dimension_numbers = #tpu.dot_dimension_numbers<[1], [0], [0], [1], [0, 0, 1, 1], [], []>} : vector<8x32xbf16>, vector<32x256xbf16>, vector<8x256xf32> -> vector<8x256xf32>
    %94 = arith.addf %88, %93 : vector<8x256xf32>
    %c3_50 = arith.constant 3 : index
    %c0_51 = arith.constant 0 : index
    %c0_52 = arith.constant 0 : index
    %95 = vector.load %arg4[%c3_50, %c0_51, %c0_52] : memref<9x8x32xf32, #tpu.memory_space<vmem>>, vector<1x8x32xf32>
    %96 = vector.shape_cast %95 : vector<1x8x32xf32> to vector<8x32xf32>
    %97 = arith.truncf %96 : vector<8x32xf32> to vector<8x32xbf16>
    %98 = vector.extract_strided_slice %1 {offsets = [0, 16], sizes = [32, 256], strides = [1, 1]} : vector<32x384xbf16> to vector<32x256xbf16>
    %cst_53 = arith.constant dense<0.000000e+00> : vector<8x256xf32>
    %99 = tpu.matmul %97, %98, %cst_53 {dimension_numbers = #tpu.dot_dimension_numbers<[1], [0], [0], [1], [0, 0, 1, 1], [], []>} : vector<8x32xbf16>, vector<32x256xbf16>, vector<8x256xf32> -> vector<8x256xf32>
    %100 = arith.addf %94, %99 : vector<8x256xf32>
    %c4_54 = arith.constant 4 : index
    %c0_55 = arith.constant 0 : index
    %c0_56 = arith.constant 0 : index
    %101 = vector.load %arg4[%c4_54, %c0_55, %c0_56] : memref<9x8x32xf32, #tpu.memory_space<vmem>>, vector<1x8x32xf32>
    %102 = vector.shape_cast %101 : vector<1x8x32xf32> to vector<8x32xf32>
    %103 = arith.truncf %102 : vector<8x32xf32> to vector<8x32xbf16>
    %104 = vector.extract_strided_slice %1 {offsets = [0, 17], sizes = [32, 256], strides = [1, 1]} : vector<32x384xbf16> to vector<32x256xbf16>
    %cst_57 = arith.constant dense<0.000000e+00> : vector<8x256xf32>
    %105 = tpu.matmul %103, %104, %cst_57 {dimension_numbers = #tpu.dot_dimension_numbers<[1], [0], [0], [1], [0, 0, 1, 1], [], []>} : vector<8x32xbf16>, vector<32x256xbf16>, vector<8x256xf32> -> vector<8x256xf32>
    %106 = arith.addf %100, %105 : vector<8x256xf32>
    %c5_58 = arith.constant 5 : index
    %c0_59 = arith.constant 0 : index
    %c0_60 = arith.constant 0 : index
    %107 = vector.load %arg4[%c5_58, %c0_59, %c0_60] : memref<9x8x32xf32, #tpu.memory_space<vmem>>, vector<1x8x32xf32>
    %108 = vector.shape_cast %107 : vector<1x8x32xf32> to vector<8x32xf32>
    %109 = arith.truncf %108 : vector<8x32xf32> to vector<8x32xbf16>
    %110 = vector.extract_strided_slice %1 {offsets = [0, 18], sizes = [32, 256], strides = [1, 1]} : vector<32x384xbf16> to vector<32x256xbf16>
    %cst_61 = arith.constant dense<0.000000e+00> : vector<8x256xf32>
    %111 = tpu.matmul %109, %110, %cst_61 {dimension_numbers = #tpu.dot_dimension_numbers<[1], [0], [0], [1], [0, 0, 1, 1], [], []>} : vector<8x32xbf16>, vector<32x256xbf16>, vector<8x256xf32> -> vector<8x256xf32>
    %112 = arith.addf %106, %111 : vector<8x256xf32>
    %c6_62 = arith.constant 6 : index
    %c0_63 = arith.constant 0 : index
    %c0_64 = arith.constant 0 : index
    %113 = vector.load %arg4[%c6_62, %c0_63, %c0_64] : memref<9x8x32xf32, #tpu.memory_space<vmem>>, vector<1x8x32xf32>
    %114 = vector.shape_cast %113 : vector<1x8x32xf32> to vector<8x32xf32>
    %115 = arith.truncf %114 : vector<8x32xf32> to vector<8x32xbf16>
    %116 = vector.extract_strided_slice %1 {offsets = [0, 32], sizes = [32, 256], strides = [1, 1]} : vector<32x384xbf16> to vector<32x256xbf16>
    %cst_65 = arith.constant dense<0.000000e+00> : vector<8x256xf32>
    %117 = tpu.matmul %115, %116, %cst_65 {dimension_numbers = #tpu.dot_dimension_numbers<[1], [0], [0], [1], [0, 0, 1, 1], [], []>} : vector<8x32xbf16>, vector<32x256xbf16>, vector<8x256xf32> -> vector<8x256xf32>
    %118 = arith.addf %112, %117 : vector<8x256xf32>
    %c7_66 = arith.constant 7 : index
    %c0_67 = arith.constant 0 : index
    %c0_68 = arith.constant 0 : index
    %119 = vector.load %arg4[%c7_66, %c0_67, %c0_68] : memref<9x8x32xf32, #tpu.memory_space<vmem>>, vector<1x8x32xf32>
    %120 = vector.shape_cast %119 : vector<1x8x32xf32> to vector<8x32xf32>
    %121 = arith.truncf %120 : vector<8x32xf32> to vector<8x32xbf16>
    %122 = vector.extract_strided_slice %1 {offsets = [0, 33], sizes = [32, 256], strides = [1, 1]} : vector<32x384xbf16> to vector<32x256xbf16>
    %cst_69 = arith.constant dense<0.000000e+00> : vector<8x256xf32>
    %123 = tpu.matmul %121, %122, %cst_69 {dimension_numbers = #tpu.dot_dimension_numbers<[1], [0], [0], [1], [0, 0, 1, 1], [], []>} : vector<8x32xbf16>, vector<32x256xbf16>, vector<8x256xf32> -> vector<8x256xf32>
    %124 = arith.addf %118, %123 : vector<8x256xf32>
    %c8 = arith.constant 8 : index
    %c0_70 = arith.constant 0 : index
    %c0_71 = arith.constant 0 : index
    %125 = vector.load %arg4[%c8, %c0_70, %c0_71] : memref<9x8x32xf32, #tpu.memory_space<vmem>>, vector<1x8x32xf32>
    %126 = vector.shape_cast %125 : vector<1x8x32xf32> to vector<8x32xf32>
    %127 = arith.truncf %126 : vector<8x32xf32> to vector<8x32xbf16>
    %128 = vector.extract_strided_slice %1 {offsets = [0, 34], sizes = [32, 256], strides = [1, 1]} : vector<32x384xbf16> to vector<32x256xbf16>
    %cst_72 = arith.constant dense<0.000000e+00> : vector<8x256xf32>
    %129 = tpu.matmul %127, %128, %cst_72 {dimension_numbers = #tpu.dot_dimension_numbers<[1], [0], [0], [1], [0, 0, 1, 1], [], []>} : vector<8x32xbf16>, vector<32x256xbf16>, vector<8x256xf32> -> vector<8x256xf32>
    %130 = arith.addf %124, %129 : vector<8x256xf32>
    %131 = vector.broadcast %43 : vector<8x1xf32> to vector<8x256xf32>
    %132 = arith.addf %130, %131 : vector<8x256xf32>
    %c0_73 = arith.constant 0 : index
    %c0_74 = arith.constant 0 : index
    %c0_75 = arith.constant 0 : index
    %133 = vector.load %arg3[%c0_73, %c0_74, %c0_75] : memref<1x8x256xf32, #tpu.memory_space<vmem>>, vector<1x8x256xf32>
    %134 = vector.shape_cast %133 : vector<1x8x256xf32> to vector<8x256xf32>
    %135 = vector.shape_cast %132 : vector<8x256xf32> to vector<1x8x256xf32>
    tpu.vector_store %arg3[%c0_73, %c0_74, %c0_75], %135 {strides = array<i32>} : memref<1x8x256xf32, #tpu.memory_space<vmem>>, vector<1x8x256xf32>,
    return
  }
  func.func @transform_0(%arg0: i32) -> (i32, i32, i32) {
    %c0_i32 = arith.constant 0 : i32
    %c0_i32_0 = arith.constant 0 : i32
    %c0_i32_1 = arith.constant 0 : i32
    return %arg0, %c0_i32, %c0_i32_0 : i32, i32, i32
  }
  func.func @transform_1(%arg0: i32) -> (i32, i32) {
    %c0_i32 = arith.constant 0 : i32
    %c0_i32_0 = arith.constant 0 : i32
    %c0_i32_1 = arith.constant 0 : i32
    return %c0_i32, %c0_i32_0 : i32, i32
  }
  func.func @transform_2(%arg0: i32) -> (i32, i32, i32) {
    %c0_i32 = arith.constant 0 : i32
    %c0_i32_0 = arith.constant 0 : i32
    %c0_i32_1 = arith.constant 0 : i32
    return %arg0, %c0_i32, %c0_i32_0 : i32, i32, i32
  }
}

</mosaic_0001>

<bundles_post_ra>
// kernel: tpu_custom_call.1
= control target key start
LH: loop header
LB: loop body
LE: loop exit
PB: predicated region body
PF: predicated region fallthrough
CT: control target
= control target key end

     0   :  { %7 = vsyncpa [#allocation4], 0  ;;  %s2890_s0 = inlined_call_operand.hbm [shape: bf16[2,32,384], index: 0, kind: input, shape index: {}]   ;;  %s2891_s1 = inlined_call_operand.hbm [shape: f32[280,256], index: 1, kind: input, shape index: {}]   ;;  %s2892_s2 = inlined_call_operand.hbm [shape: f32[2,8,256], index: 2, kind: output, shape index: {}]  }
   0x1   :  { %9 = vsyncpa [#allocation4 + $0x1], 0 }
   0x2   :  { %10 = vsyncpa [#allocation7], 0 }
   0x3   :  { %11 = vsyncpa [#allocation5], 0 }
   0x4   :  { %13 = vsyncpa [#allocation5 + $0x1], 0  ;;  %s2294_s9 = smov 0   ;;  %s2296_s10 = smov 0  }
   0x5   :  { %s2298_s11 = smov 0   ;;  %s2300_s12 = smov 0  }
   0x6 LB: > { %s2315_s13 = sadd.s32 4294967295, %s2257_s12   ;;  %s1933_s14 = sadd.s32 4294967294, %s2257_s12   ;;  %s2257_s12 = sphi %s2300_s12, %s2912_s12   ;;  %s2253_s11 = sphi %s2298_s11, %s2911_s11   ;;  %s2249_s10 = sphi %s2296_s10, %s2910_s10   ;;  %s2245_s9 = sphi %s2294_s9, %s2909_s9  }
   0x7   : > { %p39_p0 = scmp.ne.s32.totalorder %s2249_s10, %s2245_s9  ;;  %p2893_p1 = scmp.eq.s32.totalorder %s2315_s13, 0 }
   0x8   : > { %p90_p3 = scmp.eq.s32.totalorder %s1933_s14, 1  ;;  %p1934_p5 = scmp.ge.s32.totalorder %s2257_s12, 1 }
   0x9   : > { %p2324_p4 = por %p2893_p1, %p39_p0  ;;  %p97_p7 = scmp.lt.s32.totalorder %s2257_s12, 3 }
   0xa   : > { %p2329_p6 = por %p90_p3, %p39_p0  ;;  %s2259_s18 = smov [#allocation6]  }
   0xb   : > { %s2896_s15 = scalar_select %p2324_p4, 1, 0 }
   0xc   : > { %s2897_s16 = scalar_select %p2329_p6, 1, 0 }
   0xd   : > { %p2334_p8 = pnand %p1934_p5, %p97_p7  ;;  %s109_s19 = sshll.u32 %s2259_s18, 4  ;;  %s2338_s19 = int_to_ptr.vmem [resolvable:$true] %s109_s19 }
   0xe   : > { %s2350_s21 = sadd.s32 1, %s2257_s12   ;;  %s26_s22 = sadd.s32 1, %s2253_s11 }
   0xf   : > { %s2898_s17 = scalar_select %p2334_p8, 1, 0 }
  0x10   : > { %p2021_p9 = pneg %p2334_p8  ;;  %s23_s23 = ssub.s32 %s2257_s12, %s2350_s21 }
  0x11   : > { %s2129_s26 = scalar_lea.hbm %s2891_s1, 8960 }
  0x12   : > { %p2345_p11 = pnand %p2021_p9, %p2893_p1  ;;  %p2130_p12 = scmp.ne.s32.totalorder %s2891_s1, %s2129_s26 }
  0x13   : > { %p2136_p5 = scmp.lt.u32.totalorder %s2129_s26, %s2891_s1 }
  0x14   : > { %p2131_p13 = pneg %p2345_p11 }
  0x16   : > { %p2132_p0 = pnand %p2131_p13, %p2130_p12 }
  0x18   : > { %p2133_p3 = pneg %p2132_p0 }
  0x1a   : > { %p2138_p7 = pnand %p2136_p5, %p2133_p3 }
  0x1c   : > { %2141 = shalt.err (!%p2138_p7)
}
  0x1d   : > { %s2142_s3 = scalar_lea.vmem %s2338_s19, 8960  ;;  %p2150_p2 = scmp.lt.s32.totalorder %s2338_s19, %s2338_s19 }
  0x1e   : > { %p2143_p9 = scmp.ne.s32.totalorder %s2338_s19, %s2142_s3  ;;  %p2151_p6 = scmp.lt.s32.totalorder %s2142_s3, %s2142_s3 }
  0x20   : > { %p2145_p10 = pnand %p2143_p9, %p2131_p13  ;;  %p2152_p4 = por %p2151_p6, %p2150_p2 }
  0x22   : > { %p2146_p1 = pneg %p2145_p10 }
  0x24   : > { %p2153_p8 = pnand %p2152_p4, %p2146_p1 }
  0x26   : > { %2156 = shalt.err (!%p2153_p8)
}
  0x27   : > { %s2260_s4 = smov 256   ;;  %s2261_s5 = smov 16  }
  0x28   : > { %2024 = dma.hbm_to_vmem [thread:$0]  (!%p2345_p11), %s2891_s1, 8960, %s2338_s19, [#allocation7], %s2260_s4, %s2260_s4, %s2261_s5  }
  0x29   : > { %p24_p2 = scmp.eq.s32.totalorder %s23_s23, 0  ;;  %p33_p1 = scmp.ne.s32.totalorder %s2253_s11, %s2249_s10 }
  0x2a   : > { %p34_p4 = scmp.eq.s32.totalorder %s2257_s12, 0  ;;  %p2034_p6 = scmp.lt.s32.totalorder %s2257_s12, 2 }
  0x2b   : > { %s2381_s8 = scalar_select %p24_p2, %s2253_s11, %s26_s22  }
  0x2c   : > { %p35_p8 = por %p34_p4, %p33_p1  ;;  %p2900_p10 = scmp.eq.s32.totalorder %s2315_s13, 1 }
  0x2d   : > { %s123_s18 = sand.u32 1, %s2253_s11   ;;  %s2011_s24 = smul.u32 768, %s2257_s12 }
  0x2e   : > { %p2385_p12 = por %p2900_p10, %p33_p1  ;;  %s2010_s25 = smul.u32 48, %s123_s18 }
  0x2f   : > { %s2394_s27 = scalar_lea.hbm %s2890_s0, %s2011_s24  ;;  %p2396_p11 = pnand %p2034_p6, %p35_p8 }
  0x30   : > { %s127_s22 = scalar_lea.vmem [#allocation3], %s2010_s25  ;;  %s2402_s28 = scalar_lea.sflag [#allocation4], %s123_s18 }
  0x31   : > { %s134_s23 = sshll.u32 %s127_s22, 4  ;;  %s2157_s29 = scalar_lea.hbm %s2394_s27, 768  ;;  %s2400_s23 = int_to_ptr.vmem [resolvable:$true] %s134_s23 }
  0x32   : > { %p2158_p13 = scmp.ne.s32.totalorder %s2394_s27, %s2157_s29  ;;  %p2159_p0 = pneg %p2396_p11 }
  0x33   : > { %s2162_s4 = scalar_lea.hbm %s2890_s0, 1536  ;;  %p2163_p7 = scmp.lt.u32.totalorder %s2394_s27, %s2890_s0 }
  0x34   : > { %p2160_p3 = pnand %p2159_p0, %p2158_p13  ;;  %p2164_p9 = scmp.lt.u32.totalorder %s2162_s4, %s2157_s29 }
  0x35   : > { %p2166_p1 = scmp.lt.u32.totalorder %s2157_s29, %s2394_s27 }
  0x36   : > { %p2161_p5 = pneg %p2160_p3  ;;  %p2165_p2 = por %p2164_p9, %p2163_p7 }
  0x38   : > { %p2167_p4 = por %p2166_p1, %p2165_p2 }
  0x3a   : > { %p2168_p6 = pnand %p2167_p4, %p2161_p5 }
  0x3c   : > { %2171 = shalt.err (!%p2168_p6)
}
  0x3d   : > { %s2172_s7 = scalar_lea.vmem %s2400_s23, 768  ;;  %s2262_s18 = smov [#allocation3]  }
  0x3e   : > { %p2173_p8 = scmp.ne.s32.totalorder %s2400_s23, %s2172_s7  ;;  %s2177_s24 = sshll.u32 %s2262_s18, 4  ;;  %s2178_s24 = int_to_ptr.vmem [resolvable:$false] %s2177_s24 }
  0x3f   : > { %s2179_s25 = scalar_lea.vmem %s2178_s24, 1536  ;;  %p2180_p3 = scmp.lt.s32.totalorder %s2400_s23, %s2178_s24 }
  0x40   : > { %p2175_p10 = pnand %p2173_p8, %p2159_p0  ;;  %p2181_p7 = scmp.lt.s32.totalorder %s2179_s25, %s2172_s7 }
  0x42   : > { %p2176_p13 = pneg %p2175_p10  ;;  %p2182_p9 = por %p2181_p7, %p2180_p3 }
  0x44   : > { %p2183_p2 = pnand %p2182_p9, %p2176_p13 }
  0x46   : > { %2186 = shalt.err (!%p2183_p2)
}
  0x47   : > { %s2263_s20 = smov 192   ;;  %s2264_s26 = smov 12  }
  0x48   : > { %2028 = dma.hbm_to_vmem [thread:$0]  (!%p2396_p11), %s2394_s27, 768, %s2400_s23, %s2402_s28, %s2263_s20, %s2263_s20, %s2264_s26  }
  0x49   : > { %p2903_p0 = scmp.ne.s32.totalorder %s2898_s17, 0 }
  0x4a   : > { %s2433_s22 = sand.u32 (!%p2903_p0), 1, %s2249_s10   ;;  %p2904_p5 = scmp.ne.s32.totalorder (!%p2903_p0), %s2896_s15, 0 }
  0x4b   : > { %146 = sbr.rel (%p2903_p0) target bundleno = 1841 (0x731), region = 28  ;;  %s149_s30 = scalar_lea.sflag (!%p2903_p0), [#allocation4], %s2433_s22 }
  0x4c   : > { %s2012_s29 = smul.u32 (!%p2903_p0), 48, %s2433_s22 }
  0x4e   : > { %s2437_s3 = scalar_lea.vmem (!%p2903_p0), [#allocation3], %s2012_s29 }
  0x52   : > { %2232 = dma.done.wait (%p2904_p5), %s149_s30, 768  }
  0x53   : > { %2234 = vsyncadd (%p2904_p5), %s149_s30, 4294966528  ;;  %p2905_p11 = scmp.eq.s32.totalorder %s2315_s13, 0 }
  0x55   : > { %2236 = dma.done.wait (%p2905_p11), [#allocation7], 8960   ;;  %p2906_p1 = pmov %p2905_p11 }
  0x56   : > { %v2265_v0 = vmov 0   ;;  %v2452_v1 = vld [vmem:[%s2437_s3 + $0x4] ss:$12 sps:$4 sm:$0xff]   ;;  %v2455_v2 = vld [vmem:[%s2437_s3] ss:$12 sps:$4 sm:$0xff]   ;;  %vm234_vm0 = vcmask 261120  }
  0x57   : > { %2238 = vsyncadd (%p2906_p1), [#allocation7], 4294958336  ;;  %279 = vmatprep.mubr.bf16.mxu0 %v2265_v0  ;;  %373 = vmatprep.mubr.bf16.mxu1 %v2265_v0  ;;  %v2459_v3 = vld [vmem:[%s2437_s3 + $0x1c] ss:$12 sps:$4 sm:$0xff]   ;;  %v2463_v4 = vld [vmem:[%s2437_s3 + $0x18] ss:$12 sps:$4 sm:$0xff]  }
  0x58   : > { %2087 = vset.pattern.permute.xlu1 %v2265_v0  ;;  %2088 = vset.pattern.permute.xlu0 %v2265_v0  ;;  %v186_v5 = vld [vmem:[#allocation6 + $0xd0] sm:$0xff]  ;;  %v187_v6 = vld [vmem:[#allocation6 + $0xe0] sm:$0xff]  ;;  %v199_v20 = vld [vmem:[#allocation6 + $0x8] sm:$0xff]  ;;  %vm414_vm1 = vcmask 1043456   ;;  %vm555_vm2 = vcmask 293888   ;;  %s2267_s15 = smov 127  }
  0x59   : > { %247 = vmatprep.subr.bf16.mxu0 %v2452_v1  ;;  %v194_v7 = vpack.c.bf16 %v187_v6, %v186_v5  ;;  %v188_v8 = vld [vmem:[#allocation6 + $0xf0] sm:$0xff]  ;;  %v189_v9 = vld [vmem:[#allocation6 + $0x100] sm:$0xff]  ;;  %v201_v22 = vld [vmem:[#allocation6 + $0x18] sm:$0xff]  ;;  %s2268_s17 = smov 126   ;;  %s2269_s27 = smov 112   ;;  %vm745_vm3 = vcmask 253952  }
  0x5a   : > { %248 = vmatpush1.bf16.msra.mxu0 %v2455_v2  ;;  %v195_v10 = vpack.c.bf16 %v189_v9, %v188_v8  ;;  %v190_v11 = vld [vmem:[#allocation6 + $0x110] sm:$0xff]  ;;  %v191_v12 = vld [vmem:[#allocation6 + $0x120] sm:$0xff]  ;;  %v203_v34 = vld [vmem:[#allocation6 + $0x28] sm:$0xff]  ;;  %s2270_s19 = smov 111   ;;  %s2271_s23 = smov 110   ;;  %vm1242_vm4 = vcmask 1039360  }
  0x5b   : > { %249 = vmatprep.subr.bf16.mxu0 %v2459_v3  ;;  %v196_v13 = vpack.c.bf16 %v191_v12, %v190_v11  ;;  %v192_v14 = vld [vmem:[#allocation6 + $0x130] sm:$0xff]  ;;  %v193_v15 = vld [vmem:[#allocation6 + $0x140] sm:$0xff]  ;;  %v205_v36 = vld [vmem:[#allocation6 + $0x38] sm:$0xff]  ;;  %s2272_s28 = smov 96   ;;  %s2273_s4 = smov 95   ;;  %vm1354_vm5 = vcmask 1031168  }
  0x5c   : > { %v197_v16 = vpack.c.bf16 %v193_v15, %v192_v14  ;;  %v198_v17 = vld [vmem:[#allocation6] sm:$0xff]  ;;  %v200_v19 = vld [vmem:[#allocation6 + $0x10] sm:$0xff]  ;;  %v207_v55 = vld [vmem:[#allocation6 + $0x48] sm:$0xff]  ;;  %s2274_s5 = smov 94   ;;  %vm1424_vm6 = vcmask 916480   ;;  %vm1494_vm7 = vcmask 908288  }
  0x5d   : > { %v202_v31 = vld [vmem:[#allocation6 + $0x20] sm:$0xff]  ;;  %v204_v33 = vld [vmem:[#allocation6 + $0x30] sm:$0xff]  ;;  %v209_v59 = vld [vmem:[#allocation6 + $0x58] sm:$0xff]  ;;  %vm1564_vm8 = vcmask 900096   ;;  %vm1634_vm9 = vcmask 785408   ;;  %vm1704_vm10 = vcmask 777216  }
  0x5e   : > { %250 = vmatpush1.bf16.msra.mxu0 %v2463_v4  ;;  %v320_v44 = vld [vmem:[#allocation6 + $0x150] sm:$0xff]  ;;  %v321_v45 = vld [vmem:[#allocation6 + $0x160] sm:$0xff]  ;;  %vm1774_vm11 = vcmask 769024   ;;  %s2276_s6 = smov 64   ;;  %s2277_s7 = smov 32  }
  0x5f   : > { %v325_v47 = vpack.c.bf16 %v321_v45, %v320_v44  ;;  %v322_v48 = vld [vmem:[#allocation6 + $0x170] sm:$0xff]  ;;  %v323_v49 = vld [vmem:[#allocation6 + $0x180] sm:$0xff]  ;;  %s1940_s18 = sshll.u32 %s2433_s22, 4  ;;  %s1973_s24 = sshll.u32 %s2315_s13, 8 }
  0x60   : > { %v326_v50 = vpack.c.bf16 %v323_v49, %v322_v48  ;;  %v324_v51 = vld [vmem:[#allocation6 + $0x190] sm:$0xf]  ;;  %v206_v53 = vld [vmem:[#allocation6 + $0x40] sm:$0xff]  ;;  %s176_s25 = scalar_lea.vmem [#allocation8], %s1940_s18  ;;  %s2846_s30 = scalar_lea.hbm %s2892_s2, %s1973_s24 }
  0x61   : > { %1945 = vmatmul.mubr.msk.bf16.vlgmr.msra.gmra.mrb[0].mxu0 %vm234_vm0, %v194_v7  ;;  %v327_v52 = vpack.c.bf16 %v324_v51, %v324_v51  ;;  %v208_v56 = vld [vmem:[#allocation6 + $0x50] sm:$0xff]  ;;  %s1853_s20 = sshll.u32 %s176_s25, 4  ;;  %s1839_s13 = scalar_lea.sflag [#allocation5], %s2433_s22  ;;  %s2848_s20 = int_to_ptr.vmem [resolvable:$true] %s1853_s20 }
  0x62   : > { %289 = vmatprep.mubr.bf16.mxu0 %v2265_v0 }
  0x69   : > { %1946 = vmatmul.mubr.msk.bf16.gmra.mrb[4].mxu0 %vm234_vm0, %v195_v10 }
  0x6a   : > { %299 = vmatprep.mubr.bf16.mxu0 %v2265_v0 }
  0x71   : > { %1947 = vmatmul.mubr.msk.bf16.gmra.mrb[8].mxu0 %vm234_vm0, %v196_v13 }
  0x72   : > { %309 = vmatprep.mubr.bf16.mxu0 %v2265_v0 }
  0x79   : > { %1948 = vmatmul.mubr.msk.bf16.gmra.mrb[12].mxu0 %vm234_vm0, %v197_v16 }
 0x134   : > { %v281_v18 = vpop.f32.mrb[0].mxu0 }
 0x135   : > { %v283_v21 = vpop.f32.mrb[1].mxu0  ;;  %v282_v24 = vadd.f32 %v281_v18, %v198_v17 }
 0x136   : > { %v285_v23 = vpop.f32.mrb[2].mxu0  ;;  %v284_v27 = vadd.f32 %v283_v21, %v199_v20 }
 0x137   : > { %v286_v25 = vadd.f32 %v285_v23, %v200_v19  ;;  %v287_v26 = vpop.f32.mrb[3].mxu0 }
 0x138   : > { %v288_v28 = vadd.f32 %v287_v26, %v201_v22 }
 0x139   : > { %v328_v29 = vpack.c.bf16 %v286_v25, %v282_v24 }
 0x13a   : > { %v329_v30 = vpack.c.bf16 %v288_v28, %v284_v27 }
 0x13c   : > { %v291_v32 = vpop.f32.mrb[4].mxu0  ;;  %341 = vmatprep.subr.bf16.mxu1 %v329_v30  ;;  %v211_v30 = vld [vmem:[#allocation6 + $0x68] sm:$0xff] }
 0x13d   : > { %v293_v35 = vpop.f32.mrb[5].mxu0  ;;  %342 = vmatpush1.bf16.msra.mxu1 %v328_v29  ;;  %v292_v38 = vadd.f32 %v291_v32, %v202_v31  ;;  %v210_v29 = vld [vmem:[#allocation6 + $0x60] sm:$0xff] }
 0x13e   : > { %v295_v37 = vpop.f32.mrb[6].mxu0  ;;  %v294_v41 = vadd.f32 %v293_v35, %v203_v34  ;;  %v213_v34 = vld [vmem:[#allocation6 + $0x78] sm:$0xff] }
 0x13f   : > { %v296_v39 = vadd.f32 %v295_v37, %v204_v33  ;;  %v297_v40 = vpop.f32.mrb[7].mxu0 }
 0x140   : > { %v298_v42 = vadd.f32 %v297_v40, %v205_v36  ;;  %v212_v36 = vld [vmem:[#allocation6 + $0x70] sm:$0xff] }
 0x141   : > { %v330_v43 = vpack.c.bf16 %v296_v39, %v292_v38 }
 0x142   : > { %v331_v46 = vpack.c.bf16 %v298_v42, %v294_v41 }
 0x144   : > { %343 = vmatprep.subr.bf16.mxu1 %v331_v46  ;;  %v301_v54 = vpop.f32.mrb[8].mxu0 }
 0x145   : > { %344 = vmatpush1.bf16.msra.mxu1 %v330_v43  ;;  %v302_v57 = vadd.f32 %v301_v54, %v206_v53  ;;  %v303_v58 = vpop.f32.mrb[9].mxu0 }
 0x146   : > { %v304_v60 = vadd.f32 %v303_v58, %v207_v55  ;;  %v305_v61 = vpop.f32.mrb[10].mxu0 }
 0x147   : > { %v306_v62 = vadd.f32 %v305_v61, %v208_v56  ;;  %v307_v63 = vpop.f32.mrb[11].mxu0 }
 0x148   : > { %1949 = vmatmul.mubr.msk.bf16.vlgmr.msra.gmra.mrb[0].mxu1 %vm234_vm0, %v325_v47  ;;  %v308_v5 = vadd.f32 %v307_v63, %v209_v59 }
 0x149   : > { %383 = vmatprep.mubr.bf16.mxu1 %v2265_v0  ;;  %v473_v6 = vpack.c.bf16 %v306_v62, %v302_v57 }
 0x14a   : > { %v474_v7 = vpack.c.bf16 %v308_v5, %v304_v60 }
 0x14c   : > { %477 = vmatprep.subr.bf16.mxu1 %v474_v7  ;;  %v311_v27 = vpop.f32.mrb[12].mxu0 }
 0x14d   : > { %v313_v28 = vpop.f32.mrb[13].mxu0  ;;  %v312_v32 = vadd.f32 %v311_v27, %v210_v29 }
 0x14e   : > { %478 = vmatpush1.bf16.xpose.msra.mxu1 %v473_v6  ;;  %v315_v31 = vpop.f32.mrb[14].mxu0  ;;  %v314_v33 = vadd.f32 %v313_v28, %v211_v30  ;;  %v543_v30 = vld [vmem:[#allocation6 + $0x1f0] sm:$0xff] }
 0x14f   : > { %v317_v35 = vpop.f32.mrb[15].mxu0  ;;  %v316_v38 = vadd.f32 %v315_v31, %v212_v36  ;;  %1991 = vmatprep.mubr.msk.f32.mxu0 %vm555_vm2, %v543_v30 }
 0x150   : > { %1950 = vmatmul.mubr.msk.bf16.gmra.mrb[4].mxu1 %vm234_vm0, %v326_v50  ;;  %v318_v37 = vadd.f32 %v317_v35, %v213_v34 }
 0x151   : > { %393 = vmatprep.mubr.bf16.mxu1 %v2265_v0  ;;  %v475_v40 = vpack.c.bf16 %v316_v38, %v312_v32 }
 0x152   : > { %v476_v39 = vpack.c.bf16 %v318_v37, %v314_v33 }
 0x154   : > { %479 = vmatprep.subr.bf16.mxu1 %v476_v39 }
 0x156   : > { %480 = vmatpush1.bf16.xpose.msra.mxu1 %v475_v40  ;;  %v545_v40 = vld [vmem:[#allocation6 + $0x1a0] sm:$0xff] }
 0x157   : > { %1298 = vmatprep.subr.bf16.mxu1 %v2452_v1 }
 0x158   : > { %1951 = vmatmul.mubr.msk.bf16.gmra.mrb[8].mxu1 %vm234_vm0, %v327_v52 }
 0x21b   : > { %v375_v8 = vpop.f32.mrb[0].mxu1 }
 0x21c   : > { %v377_v9 = vpop.f32.mrb[1].mxu1 }
 0x21d   : > { %v379_v10 = vpop.f32.mrb[2].mxu1  ;;  %v402_v11 = vmax.f32 %v375_v8, %v377_v9 }
 0x21e   : > { %v381_v12 = vpop.f32.mrb[3].mxu1 }
 0x21f   : > { %403 = vmax.xlane.f32.xlu0 %v402_v11  ;;  %v405_v13 = vmax.f32 %v379_v10, %v381_v12 }
 0x223   : > { %406 = vmax.xlane.f32.xlu0 %v405_v13  ;;  %v385_v14 = vpop.f32.mrb[4].mxu1 }
 0x224   : > { %v387_v15 = vpop.f32.mrb[5].mxu1 }
 0x225   : > { %v389_v16 = vpop.f32.mrb[6].mxu1  ;;  %v408_v17 = vmax.f32 %v385_v14, %v387_v15 }
 0x226   : > { %v391_v18 = vpop.f32.mrb[7].mxu1 }
 0x227   : > { %409 = vmax.xlane.f32.xlu1 %v408_v17  ;;  %v411_v19 = vmax.f32 %v389_v16, %v391_v18 }
 0x22b   : > { %412 = vmax.xlane.f32.xlu1 %v411_v19  ;;  %v395_v20 = vpop.f32.mrb[8].mxu1 }
 0x22c   : > { %v415_v21 = vsel %vm414_vm1, %v395_v20, -inf  ;;  %v397_v22 = vpop.f32.mrb[9].mxu1 }
 0x22d   : > { %v416_v23 = vsel %vm414_vm1, %v397_v22, -inf  ;;  %v399_v24 = vpop.f32.mrb[10].mxu1 }
 0x22e   : > { %v417_v25 = vmax.f32 %v415_v21, %v416_v23  ;;  %v400_v26 = vpop.f32.mrb[11].mxu1 }
 0x230   : > { %418 = vmax.xlane.f32.xlu0 %v417_v25 }
 0x2ac   : > { %v404_v41 = vpop.xlane.xlu0 %403 }
 0x2ad   : > { %v420_v42 = vsub.f32 %v375_v8, %v404_v41  ;;  %v421_v43 = vsub.f32 %v377_v9, %v404_v41 }
 0x2af   : > { %v430_v44 = vmul.f32 1.442695, %v420_v42  ;;  %v432_v45 = vmul.f32 1.442695, %v421_v43  ;;  %v546_v42 = vld [vmem:[#allocation6 + $0x1b0] sm:$0xff] }
 0x2b0   : > { %v407_v46 = vpop.xlane.xlu0 %406 }
 0x2b1   : > { %2097 = vpow2.f32 %v430_v44  ;;  %v422_v47 = vsub.f32 %v379_v10, %v407_v46  ;;  %v423_v48 = vsub.f32 %v381_v12, %v407_v46 }
 0x2b2   : > { %2099 = vpow2.f32 %v432_v45 }
 0x2b3   : > { %v434_v49 = vmul.f32 1.442695, %v422_v47  ;;  %v436_v50 = vmul.f32 1.442695, %v423_v48 }
 0x2b4   : > { %v410_v51 = vpop.xlane.xlu1 %409 }
 0x2b5   : > { %2101 = vpow2.f32 %v434_v49  ;;  %v424_v52 = vsub.f32 %v385_v14, %v410_v51  ;;  %v425_v53 = vsub.f32 %v387_v15, %v410_v51 }
 0x2b6   : > { %2103 = vpow2.f32 %v436_v50 }
 0x2b7   : > { %v438_v54 = vmul.f32 1.442695, %v424_v52  ;;  %v440_v55 = vmul.f32 1.442695, %v425_v53 }
 0x2b8   : > { %v413_v56 = vpop.xlane.xlu1 %412 }
 0x2b9   : > { %2105 = vpow2.f32 %v438_v54  ;;  %v426_v57 = vsub.f32 %v389_v16, %v413_v56  ;;  %v427_v58 = vsub.f32 %v391_v18, %v413_v56  ;;  %v547_v54 = vld [vmem:[#allocation6 + $0x1c0] sm:$0xff]  ;;  %v548_v56 = vld [vmem:[#allocation6 + $0x1d0] sm:$0xff] }
 0x2ba   : > { %2107 = vpow2.f32 %v440_v55 }
 0x2bb   : > { %v2098_v59 = vpop.eup %2097  ;;  %v442_v60 = vmul.f32 1.442695, %v426_v57  ;;  %v444_v61 = vmul.f32 1.442695, %v427_v58 }
 0x2bc   : > { %v2100_v62 = vpop.eup %2099 }
 0x2bd   : > { %2109 = vpow2.f32 %v442_v60  ;;  %v419_v63 = vpop.xlane.xlu0 %418  ;;  %v450_v5 = vadd.f32 %v2100_v62, %v2098_v59 }
 0x2be   : > { %2111 = vpow2.f32 %v444_v61  ;;  %v428_v6 = vsub.f32 %v395_v20, %v419_v63  ;;  %v429_v7 = vsub.f32 %v397_v22, %v419_v63 }
 0x2bf   : > { %v2102_v8 = vpop.eup %2101  ;;  %451 = vadd.xlane.f32.xlu1 %v450_v5  ;;  %v549_v5 = vld [vmem:[#allocation6 + $0x1e0] sm:$0xf] }
 0x2c0   : > { %v2104_v9 = vpop.eup %2103  ;;  %v446_v10 = vmul.f32 1.442695, %v428_v6  ;;  %v448_v11 = vmul.f32 1.442695, %v429_v7  ;;  %v467_v12 = vpack.c.bf16 %v2102_v8, %v2098_v59  ;;  %v641_v6 = vld [vmem:[#allocation6 + $0x88] sm:$0xff]  ;;  %v643_v7 = vld [vmem:[#allocation6 + $0x98] sm:$0xff] }
 0x2c1   : > { %v468_v13 = vpack.c.bf16 %v2104_v9, %v2100_v62  ;;  %v453_v14 = vadd.f32 %v2104_v9, %v2102_v8 }
 0x2c2   : > { %2113 = vpow2.f32 %v446_v10  ;;  %v640_v10 = vld [vmem:[#allocation6 + $0x80] sm:$0xff] }
 0x2c3   : > { %v2106_v15 = vpop.eup %2105  ;;  %2115 = vpow2.f32 %v448_v11  ;;  %509 = vmatprep.mubr.bf16.mxu1 %v468_v13  ;;  %454 = vadd.xlane.f32.xlu0 %v453_v14  ;;  %v642_v11 = vld [vmem:[#allocation6 + $0x90] sm:$0xff]  ;;  %v645_v13 = vld [vmem:[#allocation6 + $0xa8] sm:$0xff]  ;;  %v647_v14 = vld [vmem:[#allocation6 + $0xb8] sm:$0xff] }
 0x2c4   : > { %v2108_v16 = vpop.eup %2107  ;;  %510 = vmatmul.mubr.bf16.vlgmr.msra.gmra.mrb[12].mxu1 %v467_v12 }
 0x2c5   : > { %v456_v17 = vadd.f32 %v2108_v16, %v2106_v15  ;;  %1299 = vmatpush1.bf16.msra.mxu1 %v2455_v2 }
 0x2c6   : > { %1300 = vmatprep.subr.bf16.mxu1 %v2459_v3 }
 0x2c7   : > { %v2110_v18 = vpop.eup %2109  ;;  %457 = vadd.xlane.f32.xlu1 %v456_v17  ;;  %v2002_v17 = vpack.c.bf16 %v643_v7, %v641_v6 }
 0x2c8   : > { %v2112_v19 = vpop.eup %2111  ;;  %v469_v20 = vpack.c.bf16 %v2110_v18, %v2106_v15 }
 0x2c9   : > { %v470_v21 = vpack.c.bf16 %v2112_v19, %v2108_v16  ;;  %v459_v22 = vadd.f32 %v2112_v19, %v2110_v18  ;;  %1301 = vmatpush1.bf16.msra.mxu1 %v2463_v4  ;;  %v544_v18 = vld [vmem:[#allocation6 + $0x200] sm:$0x1]  ;;  %v2004_v19 = vpack.c.bf16 %v642_v11, %v640_v10 }
 0x2cb   : > { %517 = vmatprep.mubr.bf16.mxu1 %v470_v21  ;;  %460 = vadd.xlane.f32.xlu0 %v459_v22  ;;  %v644_v21 = vld [vmem:[#allocation6 + $0xa0] sm:$0xff]  ;;  %v646_v22 = vld [vmem:[#allocation6 + $0xb0] sm:$0xff] }
 0x2cc   : > { %v2114_v23 = vpop.eup %2113  ;;  %518 = vmatmul.mubr.bf16.gmra.mrb[16].mxu1 %v469_v20  ;;  %v2006_v20 = vpack.c.bf16 %v647_v14, %v645_v13 }
 0x2cd   : > { %v2116_v24 = vpop.eup %2115  ;;  %v462_v25 = vsel %vm414_vm1, %v2114_v23, 0.0  ;;  %v471_v29 = vpack.c.bf16 %v2114_v23, %v2114_v23  ;;  %v2008_v23 = vpack.c.bf16 %v646_v22, %v644_v21 }
 0x2ce   : > { %v472_v26 = vpack.c.bf16 %v2116_v24, %v2116_v24  ;;  %v463_v27 = vsel %vm414_vm1, %v2116_v24, 0.0  ;;  %v2266_v24 = vmov 0.0  }
 0x2cf   : > { %v464_v28 = vadd.f32 %v463_v27, %v462_v25  ;;  %v2095_v25 = vld [vmem:[%s2437_s3 + $0x8] ss:$12 sps:$4 sm:$0xff]  }
 0x2d0   : > { %525 = vmatprep.mubr.bf16.mxu1 %v472_v26  ;;  %v2497_v26 = vld [vmem:[%s2437_s3 + $0x20] ss:$12 sps:$4 sm:$0xff]  }
 0x2d1   : > { %465 = vadd.xlane.f32.xlu1 %v464_v28 }
 0x2d4   : > { %526 = vmatmul.mubr.bf16.gmra.mrb[20].mxu1 %v471_v29 }
 0x2d5   : > { %1330 = vmatprep.mubr.bf16.mxu1 %v2265_v0 }
 0x2e1   : > { %1232 = vrot.lane.b32.xlu0 %v2452_v1, %s2267_s15 }
 0x2e2   : > { %1234 = vrot.lane.b32.xlu1 %v2095_v25, %s2267_s15 }
 0x2e5   : > { %1230 = vrot.lane.b32.xlu0 %v2455_v2, %s2267_s15 }
 0x2e6   : > { %1238 = vrot.lane.b32.xlu1 %v2459_v3, %s2267_s15 }
 0x2e9   : > { %1240 = vrot.lane.b32.xlu0 %v2497_v26, %s2267_s15 }
 0x2ea   : > { %1236 = vrot.lane.b32.xlu1 %v2463_v4, %s2267_s15  ;;  %s2278_s15 = smov [#allocation8]  }
 0x2ed   : > { %1344 = vrot.lane.b32.xlu0 %v2452_v1, %s2268_s17 }
 0x2ee   : > { %1346 = vrot.lane.b32.xlu1 %v2095_v25, %s2268_s17 }
 0x2f1   : > { %1342 = vrot.lane.b32.xlu0 %v2455_v2, %s2268_s17 }
 0x2f2   : > { %1350 = vrot.lane.b32.xlu1 %v2459_v3, %s2268_s17 }
 0x2f5   : > { %1352 = vrot.lane.b32.xlu0 %v2497_v26, %s2268_s17 }
 0x2f6   : > { %1348 = vrot.lane.b32.xlu1 %v2463_v4, %s2268_s17  ;;  %s2191_s17 = sshll.u32 %s2278_s15, 4  ;;  %s2192_s17 = int_to_ptr.vmem [resolvable:$false] %s2191_s17 }
 0x2f7   : > { %p2194_p10 = scmp.lt.s32.totalorder %s2848_s20, %s2192_s17 }
 0x2f9   : > { %1414 = vrot.lane.b32.xlu0 %v2452_v1, %s2269_s27 }
 0x2fa   : > { %1416 = vrot.lane.b32.xlu1 %v2095_v25, %s2269_s27 }
 0x2fd   : > { %1412 = vrot.lane.b32.xlu0 %v2455_v2, %s2269_s27 }
 0x2fe   : > { %1484 = vrot.lane.b32.xlu1 %v2452_v1, %s2270_s19 }
 0x301   : > { %1486 = vrot.lane.b32.xlu0 %v2095_v25, %s2270_s19 }
 0x302   : > { %1482 = vrot.lane.b32.xlu1 %v2455_v2, %s2270_s19 }
 0x305   : > { %1420 = vrot.lane.b32.xlu0 %v2459_v3, %s2269_s27 }
 0x306   : > { %1422 = vrot.lane.b32.xlu1 %v2497_v26, %s2269_s27 }
 0x309   : > { %1418 = vrot.lane.b32.xlu0 %v2463_v4, %s2269_s27  ;;  %s2193_s27 = scalar_lea.vmem %s2192_s17, 512 }
 0x30a   : > { %1490 = vrot.lane.b32.xlu1 %v2459_v3, %s2270_s19 }
 0x30d   : > { %1492 = vrot.lane.b32.xlu0 %v2497_v26, %s2270_s19 }
 0x30e   : > { %1488 = vrot.lane.b32.xlu1 %v2463_v4, %s2270_s19 }
 0x311   : > { %1554 = vrot.lane.b32.xlu0 %v2452_v1, %s2271_s23 }
 0x312   : > { %1556 = vrot.lane.b32.xlu1 %v2095_v25, %s2271_s23 }
 0x315   : > { %1552 = vrot.lane.b32.xlu0 %v2455_v2, %s2271_s23 }
 0x316   : > { %1624 = vrot.lane.b32.xlu1 %v2452_v1, %s2272_s28 }
 0x319   : > { %1626 = vrot.lane.b32.xlu0 %v2095_v25, %s2272_s28 }
 0x31a   : > { %1622 = vrot.lane.b32.xlu1 %v2455_v2, %s2272_s28 }
 0x31d   : > { %1560 = vrot.lane.b32.xlu0 %v2459_v3, %s2271_s23 }
 0x31e   : > { %1562 = vrot.lane.b32.xlu1 %v2497_v26, %s2271_s23 }
 0x321   : > { %1558 = vrot.lane.b32.xlu0 %v2463_v4, %s2271_s23 }
 0x322   : > { %1630 = vrot.lane.b32.xlu1 %v2459_v3, %s2272_s28 }
 0x325   : > { %1632 = vrot.lane.b32.xlu0 %v2497_v26, %s2272_s28 }
 0x326   : > { %1628 = vrot.lane.b32.xlu1 %v2463_v4, %s2272_s28 }
 0x329   : > { %1694 = vrot.lane.b32.xlu0 %v2452_v1, %s2273_s4 }
 0x32a   : > { %1696 = vrot.lane.b32.xlu1 %v2095_v25, %s2273_s4 }
 0x32d   : > { %1692 = vrot.lane.b32.xlu0 %v2455_v2, %s2273_s4 }
 0x32e   : > { %1764 = vrot.lane.b32.xlu1 %v2452_v1, %s2274_s5 }
 0x331   : > { %1766 = vrot.lane.b32.xlu0 %v2095_v25, %s2274_s5 }
 0x332   : > { %1762 = vrot.lane.b32.xlu1 %v2455_v2, %s2274_s5 }
 0x335   : > { %1700 = vrot.lane.b32.xlu0 %v2459_v3, %s2273_s4 }
 0x336   : > { %1702 = vrot.lane.b32.xlu1 %v2497_v26, %s2273_s4 }
 0x34c   : > { %v452_v31 = vpop.xlane.xlu1 %451 }
 0x34d   : > { %2117 = vrcp.f32 %v452_v31 }
 0x350   : > { %v455_v32 = vpop.xlane.xlu0 %454 }
 0x351   : > { %2119 = vrcp.f32 %v455_v32 }
 0x354   : > { %v458_v33 = vpop.xlane.xlu1 %457 }
 0x355   : > { %2121 = vrcp.f32 %v458_v33 }
 0x357   : > { %v2118_v35 = vpop.eup %2117 }
 0x358   : > { %v461_v34 = vpop.xlane.xlu0 %460 }
 0x359   : > { %2123 = vrcp.f32 %v461_v34 }
 0x35b   : > { %v2120_v39 = vpop.eup %2119 }
 0x35c   : > { %v1233_v3 = vpop.permute.xlu0 %1232 }
 0x35e   : > { %v466_v43 = vpop.xlane.xlu1 %465 }
 0x35f   : > { %2125 = vrcp.f32 %v466_v43  ;;  %v2122_v49 = vpop.eup %2121 }
 0x360   : > { %v1231_v31 = vpop.permute.xlu0 %1230 }
 0x361   : > { %v1243_v32 = vsel %vm1242_vm4, %v1231_v31, %v1233_v3  ;;  %v651_v31 = vlaneseq }
 0x362   : > { %v1235_v2 = vpop.permute.xlu1 %1234 }
 0x363   : > { %v2124_v53 = vpop.eup %2123  ;;  %v1244_v33 = vsel %vm1242_vm4, %v1233_v3, %v1235_v2 }
 0x366   : > { %v1239_v30 = vpop.permute.xlu1 %1238 }
 0x369   : > { %v2126_v62 = vpop.eup %2125 }
 0x36a   : > { %v1237_v34 = vpop.permute.xlu1 %1236 }
 0x397   : > { %v511_v36 = vpop.f32.mrb[12].mxu1 }
 0x398   : > { %v534_v37 = vmul.f32 %v2118_v35, %v511_v36  ;;  %v513_v38 = vpop.f32.mrb[13].mxu1  ;;  %v1241_v35 = vpop.permute.xlu0 %1240  ;;  %v1245_v36 = vsel %vm1242_vm4, %v1237_v34, %v1239_v30 }
 0x399   : > { %v514_v41 = vpop.f32.mrb[14].mxu1  ;;  %v1347_v38 = vpop.permute.xlu1 %1346 }
 0x39a   : > { %v536_v44 = vmul.f32 %v2120_v39, %v514_v41  ;;  %v516_v45 = vpop.f32.mrb[15].mxu1  ;;  %v550_v46 = vmul.f32 %v545_v40, %v534_v37  ;;  %v1246_v37 = vsel %vm1242_vm4, %v1239_v30, %v1241_v35 }
 0x39c   : > { %v551_v47 = vmul.f32 %v546_v42, %v536_v44  ;;  %v1345_v39 = vpop.permute.xlu0 %1344 }
 0x39d   : > { %v1351_v40 = vpop.permute.xlu1 %1350  ;;  %v1356_v43 = vsel %vm1354_vm5, %v1345_v39, %v1347_v38  ;;  %v2275_v38 = vmov 1966171168  }
 0x39e   : > { %v1994_v48 = vpack.c.bf16 %v551_v47, %v550_v46 }
 0x39f   : > { %v519_v50 = vpop.f32.mrb[16].mxu1 }
 0x3a0   : > { %v538_v51 = vmul.f32 %v2122_v49, %v519_v50  ;;  %v521_v52 = vpop.f32.mrb[17].mxu1  ;;  %1995 = vmatprep.subr.bf16.mxu0 %v1994_v48  ;;  %v1343_v41 = vpop.permute.xlu0 %1342 }
 0x3a1   : > { %v522_v55 = vpop.f32.mrb[18].mxu1  ;;  %1997 = vmatpush3.bf16.msra.mxu0 %v1994_v48  ;;  %v2555_v42 = vsel %vm1354_vm5, %v1343_v41, %v1345_v39  ;;  %v1349_v44 = vpop.permute.xlu1 %1348  ;;  %v765_v39 = vunpack.c.l.s4 %v2275_v38  ;;  %v649_v41 = vld [vmem:[#allocation6 + $0xc0] ss:$8 sm:$0x3] }
 0x3a2   : > { %v540_v57 = vmul.f32 %v2124_v53, %v522_v55  ;;  %v524_v58 = vpop.f32.mrb[19].mxu1  ;;  %v552_v59 = vmul.f32 %v547_v54, %v538_v51  ;;  %v2557_v46 = vsel %vm1354_vm5, %v1349_v44, %v1351_v40 }
 0x3a3   : > { %v766_v44 = vunpack.c.0.s8 %v765_v39 }
 0x3a4   : > { %v553_v60 = vmul.f32 %v548_v56, %v540_v57  ;;  %v1353_v45 = vpop.permute.xlu0 %1352 }
 0x3a5   : > { %v1417_v47 = vpop.permute.xlu1 %1416  ;;  %v2559_v49 = vsel %vm1354_vm5, %v1351_v40, %v1353_v45 }
 0x3a6   : > { %v1998_v61 = vpack.c.bf16 %v553_v60, %v552_v59 }
 0x3a7   : > { %v527_v63 = vpop.f32.mrb[20].mxu1 }
 0x3a8   : > { %v542_v8 = vmul.f32 %v2126_v62, %v527_v63  ;;  %v529_v9 = vpop.f32.mrb[21].mxu1  ;;  %1999 = vmatprep.subr.bf16.mxu0 %v1998_v61  ;;  %v1415_v48 = vpop.permute.xlu0 %1414 }
 0x3a9   : > { %v530_v12 = vpop.f32.mrb[22].mxu1  ;;  %2001 = vmatpush3.bf16.msra.mxu0 %v1998_v61  ;;  %v1485_v50 = vpop.permute.xlu1 %1484  ;;  %v1426_v53 = vsel %vm1424_vm6, %v1415_v48, %v1417_v47 }
 0x3aa   : > { %v554_v15 = vmul.f32 %v549_v5, %v542_v8  ;;  %v531_v16 = vpop.f32.mrb[23].mxu1  ;;  %1436 = vmatprep.subr.bf16.mxu1 %v1426_v53 }
 0x3ac   : > { %1989 = vmatprep.subr.msk.mxu0 %vm414_vm1, %v554_v15  ;;  %v1413_v51 = vpop.permute.xlu0 %1412 }
 0x3ad   : > { %1990 = vmatpush3.msk.msra.mxu0 %vm414_vm1, %v554_v15  ;;  %v2562_v52 = vsel %vm1424_vm6, %v1413_v51, %v1415_v48  ;;  %v1483_v54 = vpop.permute.xlu1 %1482 }
 0x3ae   : > { %1992 = vmatmul.mubr.msk.f32.vlgmr.msra.gmra.mrb[16].mxu0 %vm555_vm2, %v544_v18  ;;  %2003 = vmatprep.subr.bf16.mxu0 %v2002_v17  ;;  %v2566_v56 = vsel %vm1494_vm7, %v1483_v54, %v1485_v50 }
 0x3af   : > { %2005 = vmatpush1.bf16.msra.mxu0 %v2004_v19  ;;  %731 = vmatprep.mubr.f32.mxu0 %v2266_v24 }
 0x3b0   : > { %2007 = vmatprep.subr.bf16.mxu0 %v2006_v20  ;;  %v1487_v55 = vpop.permute.xlu0 %1486 }
 0x3b1   : > { %v1423_v57 = vpop.permute.xlu1 %1422  ;;  %v2569_v59 = vsel %vm1494_vm7, %v1485_v50, %v1487_v55 }
 0x3b3   : > { %2009 = vmatpush1.bf16.msra.mxu0 %v2008_v23 }
 0x3b4   : > { %1254 = vmatprep.subr.bf16.mxu0 %v1244_v33  ;;  %v1421_v58 = vpop.permute.xlu0 %1420 }
 0x3b5   : > { %v1491_v60 = vpop.permute.xlu1 %1490  ;;  %v2575_v6 = vsel %vm1424_vm6, %v1421_v58, %v1423_v57 }
 0x3b8   : > { %v1419_v61 = vpop.permute.xlu0 %1418 }
 0x3b9   : > { %v2572_v62 = vsel %vm1424_vm6, %v1419_v61, %v1421_v58  ;;  %v1489_v63 = vpop.permute.xlu1 %1488 }
 0x3ba   : > { %v2578_v7 = vsel %vm1494_vm7, %v1489_v63, %v1491_v60 }
 0x3bc   : > { %v1493_v5 = vpop.permute.xlu0 %1492 }
 0x3bd   : > { %v2580_v8 = vpop.permute.xlu1 %1556  ;;  %v2585_v10 = vsel %vm1494_vm7, %v1491_v60, %v1493_v5 }
 0x3c0   : > { %v2582_v9 = vpop.permute.xlu0 %1554 }
 0x3c1   : > { %v1625_v11 = vpop.permute.xlu1 %1624 }
 0x3c4   : > { %v1553_v12 = vpop.permute.xlu0 %1552 }
 0x3c5   : > { %v2589_v13 = vsel %vm1564_vm8, %v1553_v12, %v2582_v9  ;;  %v1623_v14 = vpop.permute.xlu1 %1622 }
 0x3c6   : > { %v2592_v16 = vsel %vm1634_vm9, %v1623_v14, %v1625_v11 }
 0x3c8   : > { %v1627_v15 = vpop.permute.xlu0 %1626 }
 0x3c9   : > { %v1563_v17 = vpop.permute.xlu1 %1562  ;;  %v2595_v19 = vsel %vm1634_vm9, %v1625_v11, %v1627_v15 }
 0x3cc   : > { %v1561_v18 = vpop.permute.xlu0 %1560 }
 0x3cd   : > { %v1631_v20 = vpop.permute.xlu1 %1630  ;;  %v2601_v25 = vsel %vm1564_vm8, %v1561_v18, %v1563_v17 }
 0x3d0   : > { %v1559_v21 = vpop.permute.xlu0 %1558 }
 0x3d1   : > { %v2598_v22 = vsel %vm1564_vm8, %v1559_v21, %v1561_v18  ;;  %v1629_v23 = vpop.permute.xlu1 %1628 }
 0x481   : > { %v1993_v4 = vpop.f32.mrb[16].mxu0 }
 0x482   : > { %v746_v27 = vsel %vm745_vm3, %v1993_v4, 0.0  ;;  %v631_v28 = vpop.f32.mrb[17].mxu0 }
 0x483   : > { %v744_v29 = vsel %vm234_vm0, %v631_v28, 0.0  ;;  %1955 = vmatmul.mubr.msk.f32.vlgmr.msra.gmra.mrb[18].mxu0 %vm234_vm0, %v631_v28 }
 0x484   : > { %v2550_v1 = vadd.f32 %v746_v27, %v744_v29  ;;  %737 = vmatprep.mubr.f32.mxu0 %v2266_v24  ;;  %1255 = vmatpush1.bf16.msra.mxu0 %v1243_v32  ;;  %v1633_v24 = vpop.permute.xlu0 %1632  ;;  %v1697_v27 = vpop.permute.xlu1 %1696 }
 0x485   : > { %1256 = vmatprep.subr.bf16.mxu0 %v1246_v37  ;;  %v2607_v29 = vsel %vm1634_vm9, %v1631_v20, %v1633_v24 }
 0x487   : > { %1956 = vmatmul.mubr.msk.f32.gmra.mrb[20].mxu0 %vm234_vm0, %v1993_v4  ;;  %v2604_v4 = vsel %vm1634_vm9, %v1629_v23, %v1631_v20 }
 0x488   : > { %1286 = vmatprep.mubr.bf16.mxu0 %v2265_v0  ;;  %1257 = vmatpush1.bf16.msra.mxu0 %v1245_v36  ;;  %v1695_v28 = vpop.permute.xlu0 %1694  ;;  %v1765_v2 = vpop.permute.xlu1 %1764  ;;  %v652_v36 = vshrl.u32 %v651_v31, 7 }
 0x489   : > { %1366 = vmatprep.subr.bf16.mxu0 %v1356_v43  ;;  %v2613_v33 = vsel %vm1704_vm10, %v1695_v28, %v1697_v27 }
 0x48a   : > { %v2621_v40 = vsub.s32 0, %v652_v36  ;;  %v657_v43 = vsub.s32 1, %v652_v36  ;;  %v769_v48 = vsub.s32 %v766_v44, %v652_v36 }
 0x48c   : > { %v1693_v3 = vpop.permute.xlu0 %1692  ;;  %v1763_v32 = vpop.permute.xlu1 %1762  ;;  %v654_v45 = vrot.slane %v649_v41, %v2621_v40  ;;  %v658_v47 = vrot.slane %v649_v41, %v657_v43 }
 0x48d   : > { %v2610_v30 = vsel %vm1704_vm10, %v1693_v3, %v1695_v28  ;;  %v2616_v34 = vsel %vm1774_vm11, %v1763_v32, %v1765_v2 }
 0x490   : > { %v1767_v35 = vpop.permute.xlu0 %1766 }
 0x491   : > { %v2619_v37 = vsel %vm1774_vm11, %v1765_v2, %v1767_v35 }
 0x556   : > { %v733_v50 = vpop.f32.mrb[18].mxu0 }
 0x557   : > { %v734_v51 = vadd.f32 %v733_v50, %v654_v45  ;;  %v735_v53 = vpop.f32.mrb[19].mxu0 }
 0x558   : > { %v736_v54 = vadd.f32 %v735_v53, %v658_v47 }
 0x559   : > { %v763_v55 = vcombine.high %v734_v51, %v734_v51  ;;  %v770_v57 = vrot.slane %v734_v51, %v769_v48 }
 0x55a   : > { %v990_v58 = vcombine.high %v736_v54, %v736_v54  ;;  %v997_v60 = vrot.slane %v736_v54, %v769_v48  ;;  %v739_v61 = vpop.f32.mrb[20].mxu0 }
 0x55b   : > { %v777_v63 = vrot.slane %v763_v55, %v769_v48  ;;  %v778_v5 = vcombine.high %v770_v57, %v770_v57  ;;  %v786_v11 = vrot.slane %v770_v57, %v769_v48  ;;  %v740_v12 = vadd.f32 %v739_v61, %v654_v45  ;;  %v741_v14 = vpop.f32.mrb[21].mxu0 }
 0x55c   : > { %v1004_v15 = vrot.slane %v990_v58, %v769_v48  ;;  %v1005_v17 = vcombine.high %v997_v60, %v997_v60  ;;  %v1013_v18 = vrot.slane %v997_v60, %v769_v48  ;;  %v742_v20 = vadd.f32 %v741_v14, %v658_v47 }
 0x55d   : > { %v793_v21 = vrot.slane %v777_v63, %v769_v48  ;;  %v800_v23 = vrot.slane %v778_v5, %v769_v48  ;;  %835 = vst.msk [vmem:[#allocation2] sm:$0x1] %vm745_vm3, %v786_v11  ;;  %v847_v24 = vrot.slane %v786_v11, %v2621_v40  ;;  %v779_v27 = vcombine.high %v777_v63, %v777_v63 }
 0x55e   : > { %v1020_v28 = vrot.slane %v1004_v15, %v769_v48  ;;  %v1027_v2 = vrot.slane %v1005_v17, %v769_v48  ;;  %1062 = vst.msk [vmem:[#allocation2 + $0x4] sm:$0x1] %vm745_vm3, %v1013_v18  ;;  %v818_v3 = vrot.slane %v740_v12, %v769_v48  ;;  %v1045_v31 = vrot.slane %v742_v20, %v769_v48 }
 0x55f   : > { %836 = vst.msk [vmem:[#allocation2 + $0x8] sm:$0x1] %vm745_vm3, %v800_v23  ;;  %839 = vst.msk [vmem:[#allocation2 + $0x20] sm:$0x1] %vm745_vm3, %v793_v21  ;;  %916 = vrot.lane.b32.xlu0 %v847_v24, %s2276_s6  ;;  %880 = vrot.lane.b32.xlu1 %v847_v24, %s2272_s28  ;;  %v1006_v32 = vcombine.high %v1004_v15, %v1004_v15  ;;  %v808_v35 = vcombine.high %v786_v11, %v786_v11 }
 0x560   : > { %1063 = vst.msk [vmem:[#allocation2 + $0xc] sm:$0x1] %vm745_vm3, %v1027_v2  ;;  %1066 = vst.msk [vmem:[#allocation2 + $0x24] sm:$0x1] %vm745_vm3, %v1020_v28  ;;  %v1035_v36 = vcombine.high %v1013_v18, %v1013_v18  ;;  %v1074_v38 = vrot.slane %v1013_v18, %v2621_v40  ;;  %v825_v39 = vrot.slane %v818_v3, %v769_v48 }
 0x561   : > { %v2634_v41 = vrot.slane %v1045_v31, %v769_v48  ;;  %v810_v43 = vcombine.high %v800_v23, %v800_v23  ;;  %837 = vst.msk [vmem:[#allocation2 + $0x10] sm:$0x1] %vm745_vm3, %v808_v35  ;;  %v807_v44 = vrot.slane %v779_v27, %v769_v48  ;;  %v809_v45 = vcombine.high %v793_v21, %v793_v21 }
 0x562   : > { %1064 = vst.msk [vmem:[#allocation2 + $0x14] sm:$0x1] %vm745_vm3, %v1035_v36  ;;  %843 = vst.msk [vmem:[#allocation2 + $0x40] sm:$0x1] %vm745_vm3, %v825_v39  ;;  %v1037_v47 = vcombine.high %v1027_v2, %v1027_v2  ;;  %v1034_v50 = vrot.slane %v1006_v32, %v769_v48  ;;  %v1036_v51 = vcombine.high %v1020_v28, %v1020_v28  ;;  %v748_v27 = vrot.slane %v2550_v1, 4 }
 0x563   : > { %1107 = vrot.lane.b32.xlu0 %v1074_v38, %s2272_s28  ;;  %952 = vrot.lane.b32.xlu1 %v847_v24, %s2277_s7  ;;  %1070 = vst.msk [vmem:[#allocation2 + $0x44] sm:$0x1] %vm745_vm3, %v2634_v41  ;;  %838 = vst.msk [vmem:[#allocation2 + $0x18] sm:$0x1] %vm745_vm3, %v810_v43  ;;  %v2646_v53 = vcombine.high %v807_v44, %v807_v44  ;;  %v851_v48 = vrot.slane %v800_v23, %v2621_v40  ;;  %v2127_v23 = vld [vmem:[%s2437_s3 + $0x18] ss:$12 sps:$4 sm:$0xff]   ;;  %v2730_v24 = vpop.permute.xlu1 %1702 }
 0x564   : > { %840 = vst.msk [vmem:[#allocation2 + $0x28] sm:$0x1] %vm745_vm3, %v807_v44  ;;  %841 = vst.msk [vmem:[#allocation2 + $0x30] sm:$0x1] %vm745_vm3, %v809_v45  ;;  %v2650_v54 = vcombine.high %v1034_v50, %v1034_v50  ;;  %v855_v55 = vrot.slane %v808_v35, %v2621_v40  ;;  %v863_v57 = vrot.slane %v793_v21, %v2621_v40 }
 0x565   : > { %1065 = vst.msk [vmem:[#allocation2 + $0x1c] sm:$0x1] %vm745_vm3, %v1037_v47  ;;  %1067 = vst.msk [vmem:[#allocation2 + $0x2c] sm:$0x1] %vm745_vm3, %v1034_v50  ;;  %v1078_v58 = vrot.slane %v1027_v2, %v2621_v40  ;;  %v1082_v60 = vrot.slane %v1035_v36, %v2621_v40  ;;  %v1090_v61 = vrot.slane %v1020_v28, %v2621_v40  ;;  %v2128_v28 = vld [vmem:[%s2437_s3 + $0x1c] ss:$12 sps:$4 sm:$0xff]  }
 0x566   : > { %1068 = vst.msk [vmem:[#allocation2 + $0x34] sm:$0x1] %vm745_vm3, %v1036_v51  ;;  %842 = vst.msk [vmem:[#allocation2 + $0x38] sm:$0x1] %vm745_vm3, %v2646_v53  ;;  %v859_v63 = vrot.slane %v810_v43, %v2621_v40  ;;  %v867_v5 = vrot.slane %v807_v44, %v2621_v40  ;;  %v871_v11 = vrot.slane %v809_v45, %v2621_v40  ;;  %s2187_s3 = scalar_lea.vmem %s2848_s20, 256 }
 0x567   : > { %1179 = vrot.lane.b32.xlu0 %v1074_v38, %s2277_s7  ;;  %1143 = vrot.lane.b32.xlu1 %v1074_v38, %s2276_s6  ;;  %1069 = vst.msk [vmem:[#allocation2 + $0x3c] sm:$0x1] %vm745_vm3, %v2650_v54  ;;  %v879_v12 = vrot.slane %v825_v39, %v2621_v40  ;;  %v1086_v14 = vrot.slane %v1037_v47, %v2621_v40  ;;  %p2188_p4 = scmp.ne.s32.totalorder %s2848_s20, %s2187_s3  ;;  %p2195_p13 = scmp.lt.s32.totalorder %s2193_s27, %s2187_s3 }
 0x568   : > { %v1094_v15 = vrot.slane %v1034_v50, %v2621_v40  ;;  %v1098_v17 = vrot.slane %v1036_v51, %v2621_v40  ;;  %v1106_v18 = vrot.slane %v2634_v41, %v2621_v40  ;;  %v875_v20 = vrot.slane %v2646_v53, %v2621_v40  ;;  %v754_v53 = vld [vmem:[#allocation6 + $0x210] sm:$0xff] }
 0x569   : > { %v1102_v21 = vrot.slane %v2650_v54, %v2621_v40  ;;  %v2732_v40 = vpop.permute.xlu0 %1700  ;;  %v749_v2 = vadd.f32 %v748_v27, %v2550_v1  ;;  %p2189_p6 = pnand %p2188_p4, %p2385_p12  ;;  %p2196_p3 = por %p2195_p13, %p2194_p10 }
 0x56b   : > { %918 = vrot.lane.b32.xlu1 %v851_v48, %s2276_s6  ;;  %882 = vrot.lane.b32.xlu0 %v851_v48, %s2272_s28  ;;  %p2190_p8 = pneg %p2189_p6 }
 0x56d   : > { %p2197_p7 = pnand %p2196_p3, %p2190_p8 }
 0x56f   : > { %954 = vrot.lane.b32.xlu1 %v851_v48, %s2277_s7  ;;  %884 = vrot.lane.b32.xlu0 %v855_v55, %s2272_s28 }
 0x573   : > { %920 = vrot.lane.b32.xlu1 %v855_v55, %s2276_s6  ;;  %956 = vrot.lane.b32.xlu0 %v855_v55, %s2277_s7 }
 0x577   : > { %924 = vrot.lane.b32.xlu1 %v863_v57, %s2276_s6  ;;  %888 = vrot.lane.b32.xlu0 %v863_v57, %s2272_s28 }
 0x57b   : > { %1109 = vrot.lane.b32.xlu1 %v1078_v58, %s2272_s28  ;;  %960 = vrot.lane.b32.xlu0 %v863_v57, %s2277_s7  ;;  %v1566_v57 = vsel %vm1564_vm8, %v2582_v9, %v2580_v8 }
 0x57f   : > { %1181 = vrot.lane.b32.xlu1 %v1078_v58, %s2277_s7  ;;  %1145 = vrot.lane.b32.xlu0 %v1078_v58, %s2276_s6 }
 0x583   : > { %1111 = vrot.lane.b32.xlu1 %v1082_v60, %s2272_s28  ;;  %1147 = vrot.lane.b32.xlu0 %v1082_v60, %s2276_s6 }
 0x587   : > { %1183 = vrot.lane.b32.xlu1 %v1082_v60, %s2277_s7  ;;  %1151 = vrot.lane.b32.xlu0 %v1090_v61, %s2276_s6 }
 0x58b   : > { %1115 = vrot.lane.b32.xlu1 %v1090_v61, %s2272_s28  ;;  %922 = vrot.lane.b32.xlu0 %v859_v63, %s2276_s6 }
 0x58f   : > { %1187 = vrot.lane.b32.xlu1 %v1090_v61, %s2277_s7  ;;  %926 = vrot.lane.b32.xlu0 %v867_v5, %s2276_s6 }
 0x593   : > { %886 = vrot.lane.b32.xlu1 %v859_v63, %s2272_s28  ;;  %892 = vrot.lane.b32.xlu0 %v871_v11, %s2272_s28 }
 0x597   : > { %958 = vrot.lane.b32.xlu1 %v859_v63, %s2277_s7  ;;  %964 = vrot.lane.b32.xlu0 %v871_v11, %s2277_s7 }
 0x59b   : > { %896 = vrot.lane.b32.xlu0 %v879_v12, %s2272_s28  ;;  %890 = vrot.lane.b32.xlu1 %v867_v5, %s2272_s28 }
 0x59f   : > { %968 = vrot.lane.b32.xlu0 %v879_v12, %s2277_s7  ;;  %962 = vrot.lane.b32.xlu1 %v867_v5, %s2277_s7 }
 0x5a3   : > { %1113 = vrot.lane.b32.xlu0 %v1086_v14, %s2272_s28  ;;  %928 = vrot.lane.b32.xlu1 %v871_v11, %s2276_s6 }
 0x5a7   : > { %1185 = vrot.lane.b32.xlu0 %v1086_v14, %s2277_s7  ;;  %932 = vrot.lane.b32.xlu1 %v879_v12, %s2276_s6 }
 0x5ab   : > { %1117 = vrot.lane.b32.xlu0 %v1094_v15, %s2272_s28  ;;  %1149 = vrot.lane.b32.xlu1 %v1086_v14, %s2276_s6 }
 0x5af   : > { %1189 = vrot.lane.b32.xlu0 %v1094_v15, %s2277_s7  ;;  %1153 = vrot.lane.b32.xlu1 %v1094_v15, %s2276_s6 }
 0x5b3   : > { %1155 = vrot.lane.b32.xlu0 %v1098_v17, %s2276_s6  ;;  %1119 = vrot.lane.b32.xlu1 %v1098_v17, %s2272_s28 }
 0x5b7   : > { %1159 = vrot.lane.b32.xlu0 %v1106_v18, %s2276_s6  ;;  %1191 = vrot.lane.b32.xlu1 %v1098_v17, %s2277_s7 }
 0x5bb   : > { %1123 = vrot.lane.b32.xlu1 %v1106_v18, %s2272_s28  ;;  %930 = vrot.lane.b32.xlu0 %v875_v20, %s2276_s6 }
 0x5bf   : > { %1195 = vrot.lane.b32.xlu1 %v1106_v18, %s2277_s7  ;;  %1121 = vrot.lane.b32.xlu0 %v1102_v21, %s2272_s28 }
 0x5c3   : > { %1193 = vrot.lane.b32.xlu0 %v1102_v21, %s2277_s7  ;;  %894 = vrot.lane.b32.xlu1 %v875_v20, %s2272_s28 }
 0x5c7   : > { %1698 = vrot.lane.b32.xlu0 %v2127_v23, %s2273_s4  ;;  %966 = vrot.lane.b32.xlu1 %v875_v20, %s2277_s7 }
 0x5cb   : > { %1772 = vrot.lane.b32.xlu0 %v2497_v26, %s2274_s5  ;;  %1157 = vrot.lane.b32.xlu1 %v1102_v21, %s2276_s6  ;;  %v750_v26 = vrot.slane %v749_v2, 2 }
 0x5cd   : > { %v751_v36 = vadd.f32 %v750_v26, %v749_v2 }
 0x5cf   : > { %1770 = vrot.lane.b32.xlu1 %v2128_v28, %s2274_s5  ;;  %v752_v43 = vrot.slane %v751_v36, 1 }
 0x5d1   : > { %v917_v3 = vpop.permute.xlu0 %916  ;;  %v881_v31 = vpop.permute.xlu1 %880  ;;  %v753_v50 = vadd.f32 %v752_v43, %v751_v36 }
 0x5d2   : > { %943 = vst.msk [vmem:[#allocation2 + $0x2] sm:$0x1] %vm745_vm3, %v917_v3  ;;  %907 = vst.msk [vmem:[#allocation2 + $0x1] sm:$0x1] %vm745_vm3, %v881_v31 }
 0x5d3   : > { %1768 = vrot.lane.b32.xlu1 %v2127_v23, %s2274_s5  ;;  %v755_v55 = vmul.f32 %v754_v53, %v753_v50 }
 0x5d5   : > { %v1108_v32 = vpop.permute.xlu0 %1107  ;;  %v953_v35 = vpop.permute.xlu1 %952 }
 0x5d6   : > { %1134 = vst.msk [vmem:[#allocation2 + $0x5] sm:$0x1] %vm745_vm3, %v1108_v32  ;;  %979 = vst.msk [vmem:[#allocation2 + $0x3] sm:$0x1] %vm745_vm3, %v953_v35 }
 0x5d9   : > { %v1180_v38 = vpop.permute.xlu0 %1179  ;;  %v1144_v39 = vpop.permute.xlu1 %1143 }
 0x5da   : > { %1206 = vst.msk [vmem:[#allocation2 + $0x7] sm:$0x1] %vm745_vm3, %v1180_v38  ;;  %1170 = vst.msk [vmem:[#allocation2 + $0x6] sm:$0x1] %vm745_vm3, %v1144_v39 }
 0x5dd   : > { %v919_v1 = vpop.permute.xlu1 %918  ;;  %v883_v41 = vpop.permute.xlu0 %882 }
 0x5de   : > { %944 = vst.msk [vmem:[#allocation2 + $0xa] sm:$0x1] %vm745_vm3, %v919_v1  ;;  %908 = vst.msk [vmem:[#allocation2 + $0x9] sm:$0x1] %vm745_vm3, %v883_v41 }
 0x5e1   : > { %v955_v44 = vpop.permute.xlu1 %954  ;;  %v885_v45 = vpop.permute.xlu0 %884  ;;  %v1215_v47 = vld [vmem:[#allocation2] sm:$0xff] }
 0x5e2   : > { %980 = vst.msk [vmem:[#allocation2 + $0xb] sm:$0x1] %vm745_vm3, %v955_v44  ;;  %909 = vst.msk [vmem:[#allocation2 + $0x11] sm:$0x1] %vm745_vm3, %v885_v45  ;;  %v1216_v51 = vpack.c.bf16 %v1215_v47, %v1215_v47 }
 0x5e4   : > { %1960 = vmatmul.mubr.msk.bf16.vlgmr.msra.gmra.mrb[24].mxu1 %vm234_vm0, %v1216_v51 }
 0x5e5   : > { %1437 = vmatpush1.bf16.msra.mxu1 %v2562_v52  ;;  %v921_v54 = vpop.permute.xlu1 %920  ;;  %v957_v48 = vpop.permute.xlu0 %956  ;;  %1468 = vmatprep.mubr.bf16.mxu1 %v2265_v0  ;;  %v756_v52 = vsel %vm234_vm0, %v755_v55, 0.0 }
 0x5e6   : > { %1438 = vmatprep.subr.bf16.mxu1 %v2575_v6  ;;  %945 = vst.msk [vmem:[#allocation2 + $0x12] sm:$0x1] %vm745_vm3, %v921_v54  ;;  %981 = vst.msk [vmem:[#allocation2 + $0x13] sm:$0x1] %vm745_vm3, %v957_v48 }
 0x5e9   : > { %1439 = vmatpush1.bf16.msra.mxu1 %v2572_v62  ;;  %v925_v58 = vpop.permute.xlu1 %924  ;;  %v889_v60 = vpop.permute.xlu0 %888 }
 0x5ea   : > { %1576 = vmatprep.subr.bf16.mxu1 %v1566_v57  ;;  %947 = vst.msk [vmem:[#allocation2 + $0x22] sm:$0x1] %vm745_vm3, %v925_v58  ;;  %911 = vst.msk [vmem:[#allocation2 + $0x21] sm:$0x1] %vm745_vm3, %v889_v60  ;;  %757 = vadd.xlane.f32.xlu0 %v756_v52 }
 0x5ed   : > { %v1110_v6 = vpop.permute.xlu1 %1109  ;;  %v961_v61 = vpop.permute.xlu0 %960 }
 0x5ee   : > { %1135 = vst.msk [vmem:[#allocation2 + $0xd] sm:$0x1] %vm745_vm3, %v1110_v6  ;;  %983 = vst.msk [vmem:[#allocation2 + $0x23] sm:$0x1] %vm745_vm3, %v961_v61  ;;  %v759_v6 = vld [vmem:[#allocation6 + $0x220] sm:$0xff] }
 0x5f1   : > { %v1182_v62 = vpop.permute.xlu1 %1181  ;;  %v1146_v63 = vpop.permute.xlu0 %1145 }
 0x5f2   : > { %1207 = vst.msk [vmem:[#allocation2 + $0xf] sm:$0x1] %vm745_vm3, %v1182_v62  ;;  %1171 = vst.msk [vmem:[#allocation2 + $0xe] sm:$0x1] %vm745_vm3, %v1146_v63 }
 0x5f5   : > { %v1112_v8 = vpop.permute.xlu1 %1111  ;;  %v1148_v9 = vpop.permute.xlu0 %1147 }
 0x5f6   : > { %1136 = vst.msk [vmem:[#allocation2 + $0x15] sm:$0x1] %vm745_vm3, %v1112_v8  ;;  %1172 = vst.msk [vmem:[#allocation2 + $0x16] sm:$0x1] %vm745_vm3, %v1148_v9 }
 0x5f9   : > { %v1184_v5 = vpop.permute.xlu1 %1183  ;;  %v1152_v11 = vpop.permute.xlu0 %1151  ;;  %v1218_v12 = vld [vmem:[#allocation2 + $0x8] sm:$0xff] }
 0x5fa   : > { %1208 = vst.msk [vmem:[#allocation2 + $0x17] sm:$0x1] %vm745_vm3, %v1184_v5  ;;  %1174 = vst.msk [vmem:[#allocation2 + $0x26] sm:$0x1] %vm745_vm3, %v1152_v11  ;;  %v1219_v14 = vpack.c.bf16 %v1218_v12, %v1218_v12 }
 0x5fc   : > { %1959 = vmatmul.mubr.msk.bf16.vlgmr.msra.gmra.mrb[24].mxu0 %vm234_vm0, %v1219_v14 }
 0x5fd   : > { %1367 = vmatpush1.bf16.msra.mxu0 %v2555_v42  ;;  %v1116_v15 = vpop.permute.xlu1 %1115  ;;  %v923_v17 = vpop.permute.xlu0 %922  ;;  %1398 = vmatprep.mubr.bf16.mxu0 %v2265_v0 }
 0x5fe   : > { %1138 = vst.msk [vmem:[#allocation2 + $0x25] sm:$0x1] %vm745_vm3, %v1116_v15  ;;  %1368 = vmatprep.subr.bf16.mxu0 %v2559_v49  ;;  %946 = vst.msk [vmem:[#allocation2 + $0x1a] sm:$0x1] %vm745_vm3, %v923_v17 }
 0x601   : > { %1369 = vmatpush1.bf16.msra.mxu0 %v2557_v46  ;;  %v1188_v18 = vpop.permute.xlu1 %1187  ;;  %v927_v20 = vpop.permute.xlu0 %926  ;;  %v1340_v21 = vld [vmem:[#allocation2 + $0x10] sm:$0xff] }
 0x602   : > { %1210 = vst.msk [vmem:[#allocation2 + $0x27] sm:$0x1] %vm745_vm3, %v1188_v18  ;;  %1506 = vmatprep.subr.bf16.mxu0 %v2569_v59  ;;  %948 = vst.msk [vmem:[#allocation2 + $0x2a] sm:$0x1] %vm745_vm3, %v927_v20  ;;  %v1341_v42 = vpack.c.bf16 %v1340_v21, %v1340_v21 }
 0x604   : > { %1961 = vmatmul.mubr.msk.bf16.vlgmr.msra.gmra.mrb[28].mxu0 %vm234_vm0, %v1341_v42 }
 0x605   : > { %1507 = vmatpush1.bf16.msra.mxu0 %v2566_v56  ;;  %v887_v23 = vpop.permute.xlu1 %886  ;;  %v893_v49 = vpop.permute.xlu0 %892  ;;  %1538 = vmatprep.mubr.bf16.mxu0 %v2265_v0 }
 0x606   : > { %910 = vst.msk [vmem:[#allocation2 + $0x19] sm:$0x1] %vm745_vm3, %v887_v23  ;;  %1508 = vmatprep.subr.bf16.mxu0 %v2585_v10  ;;  %913 = vst.msk [vmem:[#allocation2 + $0x31] sm:$0x1] %vm745_vm3, %v893_v49 }
 0x609   : > { %1509 = vmatpush1.bf16.msra.mxu0 %v2578_v7  ;;  %v959_v46 = vpop.permute.xlu1 %958  ;;  %v965_v59 = vpop.permute.xlu0 %964  ;;  %v1480_v27 = vld [vmem:[#allocation2 + $0x20] sm:$0xff] }
 0x60a   : > { %982 = vst.msk [vmem:[#allocation2 + $0x1b] sm:$0x1] %vm745_vm3, %v959_v46  ;;  %1646 = vmatprep.subr.bf16.mxu0 %v2595_v19  ;;  %985 = vst.msk [vmem:[#allocation2 + $0x33] sm:$0x1] %vm745_vm3, %v965_v59  ;;  %v1481_v56 = vpack.c.bf16 %v1480_v27, %v1480_v27 }
 0x60c   : > { %1963 = vmatmul.mubr.msk.bf16.vlgmr.msra.gmra.mrb[32].mxu0 %vm234_vm0, %v1481_v56 }
 0x60d   : > { %1647 = vmatpush1.bf16.msra.mxu0 %v2592_v16  ;;  %v897_v28 = vpop.permute.xlu0 %896  ;;  %v891_v10 = vpop.permute.xlu1 %890  ;;  %1678 = vmatprep.mubr.bf16.mxu0 %v2265_v0 }
 0x60e   : > { %1648 = vmatprep.subr.bf16.mxu0 %v2607_v29  ;;  %915 = vst.msk [vmem:[#allocation2 + $0x41] sm:$0x1] %vm745_vm3, %v897_v28  ;;  %912 = vst.msk [vmem:[#allocation2 + $0x29] sm:$0x1] %vm745_vm3, %v891_v10 }
 0x611   : > { %1649 = vmatpush1.bf16.msra.mxu0 %v2604_v4  ;;  %v969_v7 = vpop.permute.xlu0 %968  ;;  %v963_v19 = vpop.permute.xlu1 %962 }
 0x612   : > { %1786 = vmatprep.subr.bf16.mxu0 %v2619_v37  ;;  %987 = vst.msk [vmem:[#allocation2 + $0x43] sm:$0x1] %vm745_vm3, %v969_v7  ;;  %984 = vst.msk [vmem:[#allocation2 + $0x2b] sm:$0x1] %vm745_vm3, %v963_v19 }
 0x615   : > { %v1114_v16 = vpop.permute.xlu0 %1113  ;;  %v929_v2 = vpop.permute.xlu1 %928 }
 0x616   : > { %1137 = vst.msk [vmem:[#allocation2 + $0x1d] sm:$0x1] %vm745_vm3, %v1114_v16  ;;  %949 = vst.msk [vmem:[#allocation2 + $0x32] sm:$0x1] %vm745_vm3, %v929_v2 }
 0x619   : > { %v1186_v29 = vpop.permute.xlu0 %1185  ;;  %v933_v3 = vpop.permute.xlu1 %932 }
 0x61a   : > { %1209 = vst.msk [vmem:[#allocation2 + $0x1f] sm:$0x1] %vm745_vm3, %v1186_v29  ;;  %951 = vst.msk [vmem:[#allocation2 + $0x42] sm:$0x1] %vm745_vm3, %v933_v3 }
 0x61d   : > { %v1118_v4 = vpop.permute.xlu0 %1117  ;;  %v1150_v31 = vpop.permute.xlu1 %1149 }
 0x61e   : > { %1139 = vst.msk [vmem:[#allocation2 + $0x2d] sm:$0x1] %vm745_vm3, %v1118_v4  ;;  %1173 = vst.msk [vmem:[#allocation2 + $0x1e] sm:$0x1] %vm745_vm3, %v1150_v31 }
 0x621   : > { %v1190_v37 = vpop.permute.xlu0 %1189  ;;  %v1154_v26 = vpop.permute.xlu1 %1153 }
 0x622   : > { %1211 = vst.msk [vmem:[#allocation2 + $0x2f] sm:$0x1] %vm745_vm3, %v1190_v37  ;;  %1175 = vst.msk [vmem:[#allocation2 + $0x2e] sm:$0x1] %vm745_vm3, %v1154_v26 }
 0x625   : > { %v1156_v32 = vpop.permute.xlu0 %1155  ;;  %v1120_v35 = vpop.permute.xlu1 %1119  ;;  %v1410_v36 = vld [vmem:[#allocation2 + $0x18] sm:$0xff] }
 0x626   : > { %1176 = vst.msk [vmem:[#allocation2 + $0x36] sm:$0x1] %vm745_vm3, %v1156_v32  ;;  %1140 = vst.msk [vmem:[#allocation2 + $0x35] sm:$0x1] %vm745_vm3, %v1120_v35  ;;  %v1411_v38 = vpack.c.bf16 %v1410_v36, %v1410_v36 }
 0x628   : > { %1962 = vmatmul.mubr.msk.bf16.vlgmr.msra.gmra.mrb[28].mxu1 %vm234_vm0, %v1411_v38 }
 0x629   : > { %1577 = vmatpush1.bf16.msra.mxu1 %v2589_v13  ;;  %v1160_v39 = vpop.permute.xlu0 %1159  ;;  %v1192_v1 = vpop.permute.xlu1 %1191  ;;  %1608 = vmatprep.mubr.bf16.mxu1 %v2265_v0  ;;  %v1550_v41 = vld [vmem:[#allocation2 + $0x28] sm:$0xff] }
 0x62a   : > { %1178 = vst.msk [vmem:[#allocation2 + $0x46] sm:$0x1] %vm745_vm3, %v1160_v39  ;;  %1578 = vmatprep.subr.bf16.mxu1 %v2601_v25  ;;  %1212 = vst.msk [vmem:[#allocation2 + $0x37] sm:$0x1] %vm745_vm3, %v1192_v1  ;;  %v1551_v13 = vpack.c.bf16 %v1550_v41, %v1550_v41  ;;  %v1708_v25 = vsel %vm1704_vm10, %v2732_v40, %v2730_v24 }
 0x62d   : > { %1579 = vmatpush1.bf16.msra.mxu1 %v2598_v22  ;;  %v1124_v43 = vpop.permute.xlu1 %1123  ;;  %v931_v44 = vpop.permute.xlu0 %930 }
 0x62e   : > { %1716 = vmatprep.subr.bf16.mxu1 %v2613_v33  ;;  %1142 = vst.msk [vmem:[#allocation2 + $0x45] sm:$0x1] %vm745_vm3, %v1124_v43  ;;  %950 = vst.msk [vmem:[#allocation2 + $0x3a] sm:$0x1] %vm745_vm3, %v931_v44 }
 0x630   : > { %1964 = vmatmul.mubr.msk.bf16.vlgmr.msra.gmra.mrb[32].mxu1 %vm234_vm0, %v1551_v13 }
 0x631   : > { %1717 = vmatpush1.bf16.msra.mxu1 %v2610_v30  ;;  %v1196_v45 = vpop.permute.xlu1 %1195  ;;  %v1122_v47 = vpop.permute.xlu0 %1121  ;;  %v1620_v22 = vld [vmem:[#allocation2 + $0x30] sm:$0xff]  ;;  %1748 = vmatprep.mubr.bf16.mxu1 %v2265_v0 }
 0x632   : > { %1214 = vst.msk [vmem:[#allocation2 + $0x47] sm:$0x1] %vm745_vm3, %v1196_v45  ;;  %1718 = vmatprep.subr.bf16.mxu1 %v1708_v25  ;;  %1141 = vst.msk [vmem:[#allocation2 + $0x3d] sm:$0x1] %vm745_vm3, %v1122_v47  ;;  %v1621_v33 = vpack.c.bf16 %v1620_v22, %v1620_v22 }
 0x634   : > { %1965 = vmatmul.mubr.msk.bf16.vlgmr.msra.gmra.mrb[36].mxu0 %vm234_vm0, %v1621_v33 }
 0x635   : > { %1787 = vmatpush1.bf16.msra.mxu0 %v2616_v34  ;;  %v1194_v30 = vpop.permute.xlu0 %1193  ;;  %v895_v50 = vpop.permute.xlu1 %894  ;;  %1818 = vmatprep.mubr.bf16.mxu0 %v2265_v0 }
 0x636   : > { %1213 = vst.msk [vmem:[#allocation2 + $0x3f] sm:$0x1] %vm745_vm3, %v1194_v30  ;;  %914 = vst.msk [vmem:[#allocation2 + $0x39] sm:$0x1] %vm745_vm3, %v895_v50 }
 0x639   : > { %v1699_v24 = vpop.permute.xlu0 %1698  ;;  %v967_v51 = vpop.permute.xlu1 %966  ;;  %v1760_v58 = vld [vmem:[#allocation2 + $0x40] sm:$0xff] }
 0x63a   : > { %v1707_v53 = vsel %vm1704_vm10, %v1699_v24, %v2732_v40  ;;  %986 = vst.msk [vmem:[#allocation2 + $0x3b] sm:$0x1] %vm745_vm3, %v967_v51  ;;  %v1761_v40 = vpack.c.bf16 %v1760_v58, %v1760_v58 }
 0x63b   : > { %1719 = vmatpush1.bf16.msra.mxu1 %v1707_v53 }
 0x63d   : > { %v1158_v54 = vpop.permute.xlu1 %1157  ;;  %v1773_v34 = vpop.permute.xlu0 %1772 }
 0x63e   : > { %1177 = vst.msk [vmem:[#allocation2 + $0x3e] sm:$0x1] %vm745_vm3, %v1158_v54 }
 0x641   : > { %v1771_v48 = vpop.permute.xlu1 %1770 }
 0x642   : > { %v1778_v55 = vsel %vm1774_vm11, %v1771_v48, %v1773_v34 }
 0x643   : > { %1788 = vmatprep.subr.bf16.mxu0 %v1778_v55 }
 0x645   : > { %v1769_v0 = vpop.permute.xlu1 %1768  ;;  %v1690_v57 = vld [vmem:[#allocation2 + $0x38] sm:$0xff] }
 0x646   : > { %v1777_v60 = vsel %vm1774_vm11, %v1769_v0, %v1771_v48  ;;  %v1691_v52 = vpack.c.bf16 %v1690_v57, %v1690_v57 }
 0x647   : > { %1789 = vmatpush1.bf16.msra.mxu0 %v1777_v60 }
 0x648   : > { %1966 = vmatmul.mubr.msk.bf16.vlgmr.msra.gmra.mrb[36].mxu1 %vm234_vm0, %v1691_v52 }
 0x64a   : > { %1967 = vmatmul.mubr.msk.bf16.vlgmr.msra.gmra.mrb[40].mxu0 %vm234_vm0, %v1761_v40 }
 0x677   : > { %v758_v61 = vpop.xlane.xlu0 %757 }
 0x678   : > { %v760_v62 = vadd.f32 %v759_v6, %v758_v61 }
 0x67a   : > { %1831 = vperm.xlu1 %2087, %v760_v62  }
 0x6b7   : > { %v1332_v63 = vpop.f32.mrb[24].mxu1 }
 0x6b8   : > { %v1334_v8 = vpop.f32.mrb[25].mxu1 }
 0x6b9   : > { %v1336_v9 = vpop.f32.mrb[26].mxu1 }
 0x6ba   : > { %v1337_v5 = vpop.f32.mrb[27].mxu1 }
 0x6cf   : > { %v1288_v11 = vpop.f32.mrb[24].mxu0 }
 0x6d0   : > { %v1333_v12 = vadd.f32 %v1332_v63, %v1288_v11  ;;  %v1290_v14 = vpop.f32.mrb[25].mxu0 }
 0x6d1   : > { %v1335_v15 = vadd.f32 %v1334_v8, %v1290_v14  ;;  %v1292_v17 = vpop.f32.mrb[26].mxu0 }
 0x6d2   : > { %v1293_v18 = vpop.f32.mrb[27].mxu0 }
 0x6d7   : > { %v1400_v20 = vpop.f32.mrb[28].mxu0 }
 0x6d8   : > { %v1407_v21 = vadd.f32 %v1400_v20, %v1333_v12  ;;  %v1402_v42 = vpop.f32.mrb[29].mxu0 }
 0x6d9   : > { %v1408_v23 = vadd.f32 %v1402_v42, %v1335_v15  ;;  %v1404_v49 = vpop.f32.mrb[30].mxu0 }
 0x6da   : > { %v1405_v46 = vpop.f32.mrb[31].mxu0 }
 0x6df   : > { %v1540_v59 = vpop.f32.mrb[32].mxu0 }
 0x6e0   : > { %v1542_v27 = vpop.f32.mrb[33].mxu0 }
 0x6e1   : > { %v1544_v56 = vpop.f32.mrb[34].mxu0 }
 0x6e2   : > { %v1545_v28 = vpop.f32.mrb[35].mxu0 }
 0x6f9   : > { %v1832_v51 = vpop.permute.xlu1 %1831 }
 0x6fb   : > { %v1470_v10 = vpop.f32.mrb[28].mxu1 }
 0x6fc   : > { %v1477_v7 = vadd.f32 %v1470_v10, %v1407_v21  ;;  %v1472_v19 = vpop.f32.mrb[29].mxu1 }
 0x6fd   : > { %v1478_v16 = vadd.f32 %v1472_v19, %v1408_v23  ;;  %v1474_v2 = vpop.f32.mrb[30].mxu1 }
 0x6fe   : > { %v1475_v29 = vpop.f32.mrb[31].mxu1  ;;  %v1547_v3 = vadd.f32 %v1540_v59, %v1477_v7 }
 0x6ff   : > { %v1548_v4 = vadd.f32 %v1542_v27, %v1478_v16 }
 0x703   : > { %v1610_v31 = vpop.f32.mrb[32].mxu1 }
 0x704   : > { %v1617_v37 = vadd.f32 %v1610_v31, %v1547_v3  ;;  %v1612_v26 = vpop.f32.mrb[33].mxu1 }
 0x705   : > { %v1618_v32 = vadd.f32 %v1612_v26, %v1548_v4  ;;  %v1614_v35 = vpop.f32.mrb[34].mxu1 }
 0x706   : > { %v1615_v36 = vpop.f32.mrb[35].mxu1 }
 0x707   : > { %v1680_v38 = vpop.f32.mrb[36].mxu0 }
 0x708   : > { %v1687_v39 = vadd.f32 %v1680_v38, %v1617_v37  ;;  %v1682_v1 = vpop.f32.mrb[37].mxu0 }
 0x709   : > { %v1688_v41 = vadd.f32 %v1682_v1, %v1618_v32  ;;  %v1684_v43 = vpop.f32.mrb[38].mxu0 }
 0x70a   : > { %v1685_v44 = vpop.f32.mrb[39].mxu0 }
 0x71b   : > { %v1750_v13 = vpop.f32.mrb[36].mxu1 }
 0x71c   : > { %v1757_v45 = vadd.f32 %v1750_v13, %v1687_v39  ;;  %v1752_v25 = vpop.f32.mrb[37].mxu1 }
 0x71d   : > { %v1758_v47 = vadd.f32 %v1752_v25, %v1688_v41  ;;  %v1754_v22 = vpop.f32.mrb[38].mxu1  ;;  %v1820_v33 = vpop.f32.mrb[40].mxu0 }
 0x71e   : > { %v1827_v30 = vadd.f32 %v1820_v33, %v1757_v45  ;;  %v1755_v50 = vpop.f32.mrb[39].mxu1  ;;  %v1822_v24 = vpop.f32.mrb[41].mxu0 }
 0x71f   : > { %v1828_v53 = vadd.f32 %v1822_v24, %v1758_v47  ;;  %v1824_v54 = vpop.f32.mrb[42].mxu0 }
 0x720   : > { %v1834_v34 = vadd.f32 %v1832_v51, %v1827_v30  ;;  %v1825_v48 = vpop.f32.mrb[43].mxu0 }
 0x721   : > { %v1835_v55 = vadd.f32 %v1832_v51, %v1828_v53 }
 0x722   : > { %1836 = vst [vmem:[%s176_s25] sm:$0xff] %v1834_v34 }
 0x723   : > { %1837 = vst [vmem:[%s176_s25 + $0x8] sm:$0xff] %v1835_v55 }
 0x724   : > { %2200 = shalt.err (!%p2197_p7)
}
 0x725   : > { %s2201_s22 = scalar_lea.hbm %s2846_s30, 256  ;;  %s2205_s28 = scalar_lea.hbm %s2892_s2, 512 }
 0x726   : > { %p2202_p9 = scmp.ne.s32.totalorder %s2846_s30, %s2201_s22  ;;  %p2206_p5 = scmp.lt.u32.totalorder %s2846_s30, %s2892_s2 }
 0x727   : > { %p2207_p11 = scmp.lt.u32.totalorder %s2205_s28, %s2201_s22  ;;  %p2209_p4 = scmp.lt.u32.totalorder %s2201_s22, %s2846_s30 }
 0x728   : > { %p2203_p2 = pnand %p2202_p9, %p2385_p12 }
 0x729   : > { %p2208_p1 = por %p2207_p11, %p2206_p5 }
 0x72a   : > { %p2204_p0 = pneg %p2203_p2 }
 0x72b   : > { %p2210_p6 = por %p2209_p4, %p2208_p1 }
 0x72d   : > { %p2211_p8 = pnand %p2210_p6, %p2204_p0 }
 0x72f   : > { %2214 = shalt.err (!%p2211_p8)
}
 0x730   : > { %2019 = dma.vmem_to_hbm [thread:$0]  (%p2385_p12), %s2848_s20, 256, %s2846_s30, %s1839_s13  }
 0x731 PF: > { %s1865_s6 = sand.u32 1, %s2245_s9   ;;  %p2907_p10 = scmp.ne.s32.totalorder %s2897_s16, 0 }
 0x732   : > { %p2908_p13 = scmp.ge.s32.totalorder %s2257_s12, 2  ;;  %s1866_s7 = scalar_lea.sflag [#allocation5], %s1865_s6 }
 0x734   : > { %p2030_p3 = pnand %p2908_p13, %p2907_p10 }
 0x736   : > { %2240 = dma.done.wait (!%p2030_p3), %s1866_s7, 256  }
 0x737   : > { %2242 = vsyncadd (!%p2030_p3), %s1866_s7, 4294967040  ;;  %p16_p7 = scmp.ge.s32.totalorder %s2350_s21, 4   ;;  %s2909_s9 = smov %s2249_s10 }
 0x738   : > { %s2910_s10 = smov %s2253_s11  ;;  %s2911_s11 = smov %s2381_s8 }
 0x739   : > { %s2912_s12 = smov %s2350_s21  ;;  %18 = sbr.rel (!%p16_p7) target bundleno = 6 (0x6), region = 86 }
 0x740   :  { %1871 = vsyncpa [#allocation4], 1 }
 0x741   :  { %1873 = vsyncpa [#allocation4 + $0x1], 1 }
 0x742   :  { %1874 = vsyncpa [#allocation7], 1 }
 0x743   :  { %1875 = vsyncpa [#allocation5], 1 }
 0x744   :  { %1877 = vsyncpa [#allocation5 + $0x1], 1 }

</bundles_post_ra>
